<compile_context>
chip_gen: v7x
topology: tpu7x:2x2x1
jax: 0.10.0
libtpu: 0.0.40
codegen_flags: <defaults>
</compile_context>

<pallas_src>
import functools
import math

import jax
import jax.numpy as jnp
from jax.experimental import pallas as pl
from jax.experimental.pallas import tpu as pltpu

EPS = 1e-5
_VMEM_LIMIT = 48 * 1024 * 1024  # sized for v7x's 64 MiB VMEM (also fine on v5e/v6e)


def _pick_tile(dim, pref):
    """Largest multiple-of-128 tile <= pref that divides `dim` (or full dim)."""
    if dim % 128 != 0:
        return dim
    t = min(pref, dim)
    t -= t % 128
    if t <= 0:
        return dim
    while dim % t != 0:
        t -= 128
    return t


# ----------------------------------------------------------------------------
# Kernels
# ----------------------------------------------------------------------------
def _backbone_kernel(p_ref, w_ref, o_ref, *, n_patches):
    # p_ref: (tm, K) patch rows (tm = images_per_tile * n_patches), w_ref: (K, F)
    h = jnp.dot(p_ref[...].astype(jnp.bfloat16), w_ref[...],
                preferred_element_type=jnp.float32)          # (tm, F) f32 acc
    h = jnp.maximum(h, 0.0)                                  # ReLU
    tm, feat = h.shape
    # global average pool per image -> (images_per_tile, F)
    o_ref[...] = jnp.mean(h.reshape(tm // n_patches, n_patches, feat), axis=1)


def _linear_bn_relu_kernel(x_ref, w_ref, g_ref, b_ref, o_ref, acc_ref, *, half):
    # Linear(bias=False) -> BatchNorm1d (training batch stats, per view) -> ReLU
    k = pl.program_id(1)

    @pl.when(k == 0)
    def _():
        acc_ref[...] = jnp.zeros_like(acc_ref)

    acc_ref[...] += jnp.dot(x_ref[...].astype(jnp.bfloat16), w_ref[...],
                            preferred_element_type=jnp.float32)

    @pl.when(k == pl.num_programs(1) - 1)
    def _():
        h = acc_ref[...]                         # (2B, tn) f32
        m2, tn = h.shape
        h3 = h.reshape(2, half, tn)              # (view, B, tn): stats per view
        mean = jnp.mean(h3, axis=1, keepdims=True)
        var = jnp.mean(jnp.square(h3 - mean), axis=1, keepdims=True)  # biased var
        scale = g_ref[...] * jax.lax.rsqrt(var + EPS)                  # (2,1,tn)
        shift = b_ref[...] - mean * scale
        # single FMA + max per element
        o_ref[...] = jnp.maximum(h3 * scale + shift, 0.0).reshape(m2, tn)


def _linear_kernel(x_ref, w_ref, o_ref, acc_ref):
    # final projector Linear (bias=False), no BN / ReLU
    k = pl.program_id(1)

    @pl.when(k == 0)
    def _():
        acc_ref[...] = jnp.zeros_like(acc_ref)

    acc_ref[...] += jnp.dot(x_ref[...].astype(jnp.bfloat16), w_ref[...],
                            preferred_element_type=jnp.float32)

    @pl.when(k == pl.num_programs(1) - 1)
    def _():
        o_ref[...] = acc_ref[...]


def _bn_scale_kernel(z_ref, o_ref, *, half, inv_sqrt_b):
    # BatchNorm1d(affine=False) per view, with 1/sqrt(B) folded in so the
    # tiled c-matmul needs no extra /batch_size pass over the D x D matrix.
    z = z_ref[...]
    m2, tn = z.shape
    z3 = z.reshape(2, half, tn)
    mean = jnp.mean(z3, axis=1, keepdims=True)
    var = jnp.mean(jnp.square(z3 - mean), axis=1, keepdims=True)
    scale = jax.lax.rsqrt(var + EPS) * inv_sqrt_b
    o_ref[...] = ((z3 - mean) * scale).reshape(m2, tn)


def _loss_tile_kernel(n1_ref, n2_ref, loss_ref, *, lambd):
    # One (td, td) tile of c = bn(z1)/sqrt(B) .T @ bn(z2)/sqrt(B).
    i = pl.program_id(0)
    j = pl.program_id(1)

    @pl.when((i == 0) & (j == 0))
    def _():
        loss_ref[0, 0] = 0.0

    c = jax.lax.dot_general(
        n1_ref[...].astype(jnp.bfloat16), n2_ref[...].astype(jnp.bfloat16),
        dimension_numbers=(((0,), (0,)), ((), ())),
        preferred_element_type=jnp.float32)      # (td, td)
    # TODO(synk): torch.distributed.all_reduce(c) omitted (single device).

    # off-diagonal contribution: lambd * sum(c^2) over the whole tile
    loss_ref[0, 0] += lambd * jnp.sum(c * c)

    # diagonal correction only on diagonal tiles: +sum((diag-1)^2) - lambd*sum(diag^2)
    @pl.when(i == j)
    def _():
        td = c.shape[0]
        row = jax.lax.broadcasted_iota(jnp.int32, (td, td), 0)
        col = jax.lax.broadcasted_iota(jnp.int32, (td, td), 1)
        eye = row == col
        loss_ref[0, 0] += jnp.sum(
            jnp.where(eye, (c - 1.0) ** 2 - lambd * (c * c), 0.0))


# ----------------------------------------------------------------------------
# Wrappers (reshapes + pallas_call plumbing)
# ----------------------------------------------------------------------------
def backbone(x_nhwc, w_conv, patch):
    n, h, w, c = x_nhwc.shape
    k, feat = w_conv.shape
    assert k == patch * patch * c
    n_patches = (h // patch) * (w // patch)
    # patchify (stride == kernel size conv expressed as one big 2D matmul)
    p = x_nhwc.reshape(n, h // patch, patch, w // patch, patch, c)
    p = p.transpose(0, 1, 3, 2, 4, 5).reshape(n * n_patches, k)

    imgs_per_tile = 8 if n % 8 == 0 else n
    tm = imgs_per_tile * n_patches
    grid = (n // imgs_per_tile,)
    return pl.pallas_call(
        functools.partial(_backbone_kernel, n_patches=n_patches),
        grid=grid,
        in_specs=[pl.BlockSpec((tm, k), lambda m: (m, 0)),
                  pl.BlockSpec((k, feat), lambda m: (0, 0))],
        out_specs=pl.BlockSpec((imgs_per_tile, feat), lambda m: (m, 0)),
        out_shape=jax.ShapeDtypeStruct((n, feat), jnp.float32),
        compiler_params=pltpu.CompilerParams(
            dimension_semantics=("parallel",),
            vmem_limit_bytes=_VMEM_LIMIT),
    )(p, w_conv)


def linear_bn_relu(x, w, gamma, beta, *, half, block_n=512, block_k=512):
    m, kdim = x.shape
    _, n = w.shape
    tn = _pick_tile(n, block_n)
    tk = _pick_tile(kdim, block_k)
    return pl.pallas_call(
        functools.partial(_linear_bn_relu_kernel, half=half),
        grid=(n // tn, kdim // tk),
        in_specs=[pl.BlockSpec((m, tk), lambda j, kk: (0, kk)),
                  pl.BlockSpec((tk, tn), lambda j, kk: (kk, j)),
                  pl.BlockSpec((1, tn), lambda j, kk: (0, j)),
                  pl.BlockSpec((1, tn), lambda j, kk: (0, j))],
        out_specs=pl.BlockSpec((m, tn), lambda j, kk: (0, j)),
        out_shape=jax.ShapeDtypeStruct((m, n), jnp.float32),
        scratch_shapes=[pltpu.VMEM((m, tn), jnp.float32)],
        compiler_params=pltpu.CompilerParams(
            dimension_semantics=("parallel", "arbitrary"),
            vmem_limit_bytes=_VMEM_LIMIT),
    )(x, w, gamma, beta)


def linear(x, w, *, block_n=512, block_k=512):
    m, kdim = x.shape
    _, n = w.shape
    tn = _pick_tile(n, block_n)
    tk = _pick_tile(kdim, block_k)
    return pl.pallas_call(
        _linear_kernel,
        grid=(n // tn, kdim // tk),
        in_specs=[pl.BlockSpec((m, tk), lambda j, kk: (0, kk)),
                  pl.BlockSpec((tk, tn), lambda j, kk: (kk, j))],
        out_specs=pl.BlockSpec((m, tn), lambda j, kk: (0, j)),
        out_shape=jax.ShapeDtypeStruct((m, n), jnp.float32),
        scratch_shapes=[pltpu.VMEM((m, tn), jnp.float32)],
        compiler_params=pltpu.CompilerParams(
            dimension_semantics=("parallel", "arbitrary"),
            vmem_limit_bytes=_VMEM_LIMIT),
    )(x, w)


def barlow_loss(z, batch_size, lambd, *, block_d=512):
    two_b, d = z.shape
    b = batch_size
    assert two_b == 2 * b and b % 8 == 0  # 8-sublane block requirement
    td = _pick_tile(d, block_d)

    # 1) per-view BN(affine=False) normalize with 1/sqrt(B) folded in, tiled over D
    zn = pl.pallas_call(
        functools.partial(_bn_scale_kernel, half=b,
                          inv_sqrt_b=1.0 / math.sqrt(batch_size)),
        grid=(d // td,),
        in_specs=[pl.BlockSpec((two_b, td), lambda j: (0, j))],
        out_specs=pl.BlockSpec((two_b, td), lambda j: (0, j)),
        out_shape=jax.ShapeDtypeStruct((two_b, d), jnp.float32),
        compiler_params=pltpu.CompilerParams(
            dimension_semantics=("parallel",),
            vmem_limit_bytes=_VMEM_LIMIT),
    )(z)

    # 2) tiled cross-correlation + Barlow-Twins reduction, scalar loss in SMEM
    loss = pl.pallas_call(
        functools.partial(_loss_tile_kernel, lambd=float(lambd)),
        grid=(d // td, d // td),
        in_specs=[pl.BlockSpec((b, td), lambda i, j: (0, i)),   # view-1 rows [0, B)
                  pl.BlockSpec((b, td), lambda i, j: (1, j))],  # view-2 rows [B, 2B)
        out_specs=pl.BlockSpec(memory_space=pltpu.MemorySpace.SMEM),
        out_shape=jax.ShapeDtypeStruct((1, 1), jnp.float32),
        compiler_params=pltpu.CompilerParams(
            dimension_semantics=("arbitrary", "arbitrary"),
            vmem_limit_bytes=_VMEM_LIMIT),
    )(zn, zn)
    return loss[0, 0]


def barlow_twins_forward(params, y1_nchw, y2_nchw, *, patch, batch_size, lambd,
                         block_n=512, block_k=512):
    # Concatenate views -> one 2B-row batch for the matmuls; BN stats stay per view.
    y = jnp.concatenate([y1_nchw, y2_nchw], axis=0)
    y = jnp.transpose(y, (0, 2, 3, 1)).astype(jnp.float32)      # NCHW -> NHWC

    h = backbone(y, params["w_conv"], patch)                    # (2B, FEAT)
    for (w, g, bta) in params["proj_hidden"]:
        h = linear_bn_relu(h, w, g, bta, half=batch_size,
                           block_n=block_n, block_k=block_k)
    z = linear(h, params["proj_out"], block_n=block_n, block_k=block_k)
    return barlow_loss(z, batch_size, lambd, block_d=block_n)


# ----------------------------------------------------------------------------
# Parameter init + demo
# ----------------------------------------------------------------------------
def init_params(key, feat, sizes, patch, in_ch):
    k = patch * patch * in_ch
    keys = jax.random.split(key, len(sizes) + 1)

    def w_init(kk, shape, fan_in):
        w = jax.random.normal(kk, shape, jnp.float32) * (1.0 / math.sqrt(fan_in))
        return w.astype(jnp.bfloat16)   # weights stored bf16 (halves DMA bytes)

    params = {"w_conv": w_init(keys[0], (k, feat), k), "proj_hidden": []}
    dims = [feat] + sizes
    for i in range(len(sizes) - 1):
        w = w_init(keys[i + 1], (dims[i], dims[i + 1]), dims[i])
        gamma = jnp.ones((1, dims[i + 1]), jnp.float32)
        beta = jnp.zeros((1, dims[i + 1]), jnp.float32)
        params["proj_hidden"].append((w, gamma, beta))
    params["proj_out"] = w_init(keys[-1], (dims[-2], dims[-1]), dims[-2])
    return params


if __name__ == "__main__":
    # Small synthetic config (scaled-down analogue of 2048 + "8192-8192-8192").
    # Feature dims are multiples of 128 for lane-dense stores.
    BATCH = 8
    IN_CH = 4
    SPATIAL = 16
    PATCH = 4
    FEAT = 256                       # backbone feature dim (analogue of 2048)
    PROJ_SIZES = [256, 256, 256]     # analogue of args.projector = "8192-8192-8192"
    LAMBD = 0.0051

    key = jax.random.PRNGKey(0)
    k_p, k_y1, k_y2 = jax.random.split(key, 3)
    params = init_params(k_p, FEAT, PROJ_SIZES, PATCH, IN_CH)

    y1 = jax.random.normal(k_y1, (BATCH, IN_CH, SPATIAL, SPATIAL), jnp.float32)
    y2 = jax.random.normal(k_y2, (BATCH, IN_CH, SPATIAL, SPATIAL), jnp.float32)

    # block_n/block_k = 128 so the demo exercises real 2x2 tiling grids; at full
    # BarlowTwins sizes use the 512-sized defaults (fits v7x's 64 MiB VMEM).
    fwd = jax.jit(functools.partial(
        barlow_twins_forward, patch=PATCH, batch_size=BATCH, lambd=LAMBD,
        block_n=128, block_k=128))

    loss = fwd(params, y1, y2)
    jax.block_until_ready(loss)
    assert loss.shape == () and jnp.isfinite(loss)
    print("KERNEL_OK")
</pallas_src>

<mosaic_0001>
module attributes {stable_mosaic.version = 11 : i64} {
  func.func @_backbone_kernel(%arg0: i32, %arg1: memref<128x64xf32, #tpu.memory_space<vmem>>, %arg2: memref<64x256xbf16, #tpu.memory_space<vmem>>, %arg3: memref<8x256xf32, #tpu.memory_space<vmem>>) attributes {dimension_semantics = [#tpu.dimension_semantics<parallel>], iteration_bounds = array<i64: 2>, scalar_prefetch = 0 : i64, scratch_operands = 0 : i64, tpu.core_type = #tpu.core_type<tc>, window_params = [{transform_indices = @transform_0, window_bounds = array<i64: 128, 64>}, {pipeline_mode = #tpu.pipeline_mode<synchronous>, transform_indices = @transform_1, window_bounds = array<i64: 64, 256>}, {transform_indices = @transform_2, window_bounds = array<i64: 8, 256>}]} {
    %c0 = arith.constant 0 : index
    %c0_0 = arith.constant 0 : index
    %0 = vector.load %arg1[%c0, %c0_0] : memref<128x64xf32, #tpu.memory_space<vmem>>, vector<128x64xf32>
    %1 = arith.truncf %0 : vector<128x64xf32> to vector<128x64xbf16>
    %c0_1 = arith.constant 0 : index
    %c0_2 = arith.constant 0 : index
    %2 = vector.load %arg2[%c0_1, %c0_2] : memref<64x256xbf16, #tpu.memory_space<vmem>>, vector<64x256xbf16>
    %cst = arith.constant dense<0.000000e+00> : vector<128x256xf32>
    %3 = tpu.matmul %1, %2, %cst {dimension_numbers = #tpu.dot_dimension_numbers<[1], [0], [0], [1], [0, 0, 1, 1], [], []>} : vector<128x64xbf16>, vector<64x256xbf16>, vector<128x256xf32> -> vector<128x256xf32>
    %cst_3 = arith.constant 0.000000e+00 : f32
    %4 = vector.broadcast %cst_3 : f32 to vector<128x256xf32>
    %5 = arith.maximumf %3, %4 : vector<128x256xf32>
    %6 = vector.shape_cast %5 : vector<128x256xf32> to vector<8x16x256xf32>
    %cst_4 = arith.constant dense<0.000000e+00> : vector<8x256xf32>
    %7 = vector.multi_reduction <add>, %6, %cst_4 [1] : vector<8x16x256xf32> to vector<8x256xf32>
    %cst_5 = arith.constant 1.600000e+01 : f32
    %8 = vector.broadcast %cst_5 : f32 to vector<8x256xf32>
    %9 = arith.divf %7, %8 : vector<8x256xf32>
    %c0_6 = arith.constant 0 : index
    %c0_7 = arith.constant 0 : index
    %10 = vector.load %arg3[%c0_6, %c0_7] : memref<8x256xf32, #tpu.memory_space<vmem>>, vector<8x256xf32>
    tpu.vector_store %arg3[%c0_6, %c0_7], %9 {strides = array<i32>} : memref<8x256xf32, #tpu.memory_space<vmem>>, vector<8x256xf32>,
    return
  }
  func.func @transform_0(%arg0: i32) -> (i32, i32) {
    %c0_i32 = arith.constant 0 : i32
    %c0_i32_0 = arith.constant 0 : i32
    return %arg0, %c0_i32 : i32, i32
  }
  func.func @transform_1(%arg0: i32) -> (i32, i32) {
    %c0_i32 = arith.constant 0 : i32
    %c0_i32_0 = arith.constant 0 : i32
    %c0_i32_1 = arith.constant 0 : i32
    return %c0_i32, %c0_i32_0 : i32, i32
  }
  func.func @transform_2(%arg0: i32) -> (i32, i32) {
    %c0_i32 = arith.constant 0 : i32
    %c0_i32_0 = arith.constant 0 : i32
    return %arg0, %c0_i32 : i32, i32
  }
}

module attributes {stable_mosaic.version = 11 : i64} {
  func.func @_linear_bn_relu_kernel(%arg0: i32, %arg1: i32, %arg2: memref<16x128xf32, #tpu.memory_space<vmem>>, %arg3: memref<128x128xbf16, #tpu.memory_space<vmem>>, %arg4: memref<1x128xf32, #tpu.memory_space<vmem>>, %arg5: memref<1x128xf32, #tpu.memory_space<vmem>>, %arg6: memref<16x128xf32, #tpu.memory_space<vmem>>, %arg7: memref<16x128xf32, #tpu.memory_space<vmem>>) attributes {dimension_semantics = [#tpu.dimension_semantics<parallel>, #tpu.dimension_semantics<arbitrary>], iteration_bounds = array<i64: 2, 2>, scalar_prefetch = 0 : i64, scratch_operands = 1 : i64, tpu.core_type = #tpu.core_type<tc>, window_params = [{transform_indices = @transform_0, window_bounds = array<i64: 16, 128>}, {transform_indices = @transform_1, window_bounds = array<i64: 128, 128>}, {transform_indices = @transform_2, window_bounds = array<i64: 1, 128>}, {transform_indices = @transform_3, window_bounds = array<i64: 1, 128>}, {transform_indices = @transform_4, window_bounds = array<i64: 16, 128>}]} {
    %c0_i32 = arith.constant 0 : i32
    %0 = arith.cmpi eq, %arg1, %c0_i32 : i32
    %1 = arith.extui %0 : i1 to i32
    %c0_i32_0 = arith.constant 0 : i32
    %2 = arith.cmpi ne, %1, %c0_i32_0 : i32
    scf.if %2 {
      %cst_9 = arith.constant 0.000000e+00 : f32
      %13 = vector.broadcast %cst_9 : f32 to vector<16x128xf32>
      %c0_10 = arith.constant 0 : index
      %c0_11 = arith.constant 0 : index
      %14 = vector.load %arg7[%c0_10, %c0_11] : memref<16x128xf32, #tpu.memory_space<vmem>>, vector<16x128xf32>
      tpu.vector_store %arg7[%c0_10, %c0_11], %13 {strides = array<i32>} : memref<16x128xf32, #tpu.memory_space<vmem>>, vector<16x128xf32>,
    } else {
    }
    %c0 = arith.constant 0 : index
    %c0_1 = arith.constant 0 : index
    %3 = vector.load %arg7[%c0, %c0_1] : memref<16x128xf32, #tpu.memory_space<vmem>>, vector<16x128xf32>
    %c0_2 = arith.constant 0 : index
    %c0_3 = arith.constant 0 : index
    %4 = vector.load %arg2[%c0_2, %c0_3] : memref<16x128xf32, #tpu.memory_space<vmem>>, vector<16x128xf32>
    %5 = arith.truncf %4 : vector<16x128xf32> to vector<16x128xbf16>
    %c0_4 = arith.constant 0 : index
    %c0_5 = arith.constant 0 : index
    %6 = vector.load %arg3[%c0_4, %c0_5] : memref<128x128xbf16, #tpu.memory_space<vmem>>, vector<128x128xbf16>
    %cst = arith.constant dense<0.000000e+00> : vector<16x128xf32>
    %7 = tpu.matmul %5, %6, %cst {dimension_numbers = #tpu.dot_dimension_numbers<[1], [0], [0], [1], [0, 0, 1, 1], [], []>} : vector<16x128xbf16>, vector<128x128xbf16>, vector<16x128xf32> -> vector<16x128xf32>
    %8 = arith.addf %3, %7 : vector<16x128xf32>
    %c0_6 = arith.constant 0 : index
    %c0_7 = arith.constant 0 : index
    %9 = vector.load %arg7[%c0_6, %c0_7] : memref<16x128xf32, #tpu.memory_space<vmem>>, vector<16x128xf32>
    tpu.vector_store %arg7[%c0_6, %c0_7], %8 {strides = array<i32>} : memref<16x128xf32, #tpu.memory_space<vmem>>, vector<16x128xf32>,
    %c1_i32 = arith.constant 1 : i32
    %10 = arith.cmpi eq, %arg1, %c1_i32 : i32
    %11 = arith.extui %10 : i1 to i32
    %c0_i32_8 = arith.constant 0 : i32
    %12 = arith.cmpi ne, %11, %c0_i32_8 : i32
    scf.if %12 {
      %c0_9 = arith.constant 0 : index
      %c0_10 = arith.constant 0 : index
      %13 = vector.load %arg7[%c0_9, %c0_10] : memref<16x128xf32, #tpu.memory_space<vmem>>, vector<16x128xf32>
      %14 = vector.shape_cast %13 : vector<16x128xf32> to vector<2x8x128xf32>
      %cst_11 = arith.constant dense<0.000000e+00> : vector<2x128xf32>
      %15 = vector.multi_reduction <add>, %14, %cst_11 [1] : vector<2x8x128xf32> to vector<2x128xf32>
      %16 = vector.shape_cast %15 : vector<2x128xf32> to vector<2x1x128xf32>
      %cst_12 = arith.constant 8.000000e+00 : f32
      %17 = vector.broadcast %cst_12 : f32 to vector<2x1x128xf32>
      %18 = arith.divf %16, %17 : vector<2x1x128xf32>
      %19 = vector.broadcast %18 : vector<2x1x128xf32> to vector<2x8x128xf32>
      %20 = arith.subf %14, %19 : vector<2x8x128xf32>
      %21 = arith.mulf %20, %20 : vector<2x8x128xf32>
      %cst_13 = arith.constant dense<0.000000e+00> : vector<2x128xf32>
      %22 = vector.multi_reduction <add>, %21, %cst_13 [1] : vector<2x8x128xf32> to vector<2x128xf32>
      %23 = vector.shape_cast %22 : vector<2x128xf32> to vector<2x1x128xf32>
      %cst_14 = arith.constant 8.000000e+00 : f32
      %24 = vector.broadcast %cst_14 : f32 to vector<2x1x128xf32>
      %25 = arith.divf %23, %24 : vector<2x1x128xf32>
      %c0_15 = arith.constant 0 : index
      %c0_16 = arith.constant 0 : index
      %26 = vector.load %arg4[%c0_15, %c0_16] : memref<1x128xf32, #tpu.memory_space<vmem>>, vector<1x128xf32>
      %cst_17 = arith.constant 9.99999974E-6 : f32
      %27 = vector.broadcast %cst_17 : f32 to vector<2x1x128xf32>
      %28 = arith.addf %25, %27 : vector<2x1x128xf32>
      %29 = math.rsqrt %28 : vector<2x1x128xf32>
      %30 = vector.shape_cast %26 : vector<1x128xf32> to vector<1x1x128xf32>
      %31 = vector.broadcast %30 : vector<1x1x128xf32> to vector<2x1x128xf32>
      %32 = arith.mulf %31, %29 : vector<2x1x128xf32>
      %c0_18 = arith.constant 0 : index
      %c0_19 = arith.constant 0 : index
      %33 = vector.load %arg5[%c0_18, %c0_19] : memref<1x128xf32, #tpu.memory_space<vmem>>, vector<1x128xf32>
      %34 = arith.mulf %18, %32 : vector<2x1x128xf32>
      %35 = vector.shape_cast %33 : vector<1x128xf32> to vector<1x1x128xf32>
      %36 = vector.broadcast %35 : vector<1x1x128xf32> to vector<2x1x128xf32>
      %37 = arith.subf %36, %34 : vector<2x1x128xf32>
      %38 = vector.broadcast %32 : vector<2x1x128xf32> to vector<2x8x128xf32>
      %39 = arith.mulf %14, %38 : vector<2x8x128xf32>
      %40 = vector.broadcast %37 : vector<2x1x128xf32> to vector<2x8x128xf32>
      %41 = arith.addf %39, %40 : vector<2x8x128xf32>
      %cst_20 = arith.constant 0.000000e+00 : f32
      %42 = vector.broadcast %cst_20 : f32 to vector<2x8x128xf32>
      %43 = arith.maximumf %41, %42 : vector<2x8x128xf32>
      %44 = vector.shape_cast %43 : vector<2x8x128xf32> to vector<16x128xf32>
      %c0_21 = arith.constant 0 : index
      %c0_22 = arith.constant 0 : index
      %45 = vector.load %arg6[%c0_21, %c0_22] : memref<16x128xf32, #tpu.memory_space<vmem>>, vector<16x128xf32>
      tpu.vector_store %arg6[%c0_21, %c0_22], %44 {strides = array<i32>} : memref<16x128xf32, #tpu.memory_space<vmem>>, vector<16x128xf32>,
    } else {
    }
    return
  }
  func.func @transform_0(%arg0: i32, %arg1: i32) -> (i32, i32) {
    %c0_i32 = arith.constant 0 : i32
    %c0_i32_0 = arith.constant 0 : i32
    return %c0_i32, %arg1 : i32, i32
  }
  func.func @transform_1(%arg0: i32, %arg1: i32) -> (i32, i32) {
    %c0_i32 = arith.constant 0 : i32
    return %arg1, %arg0 : i32, i32
  }
  func.func @transform_2(%arg0: i32, %arg1: i32) -> (i32, i32) {
    %c0_i32 = arith.constant 0 : i32
    %c0_i32_0 = arith.constant 0 : i32
    return %c0_i32, %arg0 : i32, i32
  }
  func.func @transform_3(%arg0: i32, %arg1: i32) -> (i32, i32) {
    %c0_i32 = arith.constant 0 : i32
    %c0_i32_0 = arith.constant 0 : i32
    return %c0_i32, %arg0 : i32, i32
  }
  func.func @transform_4(%arg0: i32, %arg1: i32) -> (i32, i32) {
    %c0_i32 = arith.constant 0 : i32
    %c0_i32_0 = arith.constant 0 : i32
    return %c0_i32, %arg0 : i32, i32
  }
}

module attributes {stable_mosaic.version = 11 : i64} {
  func.func @_linear_kernel(%arg0: i32, %arg1: i32, %arg2: memref<16x128xf32, #tpu.memory_space<vmem>>, %arg3: memref<128x128xbf16, #tpu.memory_space<vmem>>, %arg4: memref<16x128xf32, #tpu.memory_space<vmem>>, %arg5: memref<16x128xf32, #tpu.memory_space<vmem>>) attributes {dimension_semantics = [#tpu.dimension_semantics<parallel>, #tpu.dimension_semantics<arbitrary>], iteration_bounds = array<i64: 2, 2>, scalar_prefetch = 0 : i64, scratch_operands = 1 : i64, tpu.core_type = #tpu.core_type<tc>, window_params = [{transform_indices = @transform_0, window_bounds = array<i64: 16, 128>}, {transform_indices = @transform_1, window_bounds = array<i64: 128, 128>}, {transform_indices = @transform_2, window_bounds = array<i64: 16, 128>}]} {
    %c0_i32 = arith.constant 0 : i32
    %0 = arith.cmpi eq, %arg1, %c0_i32 : i32
    %1 = arith.extui %0 : i1 to i32
    %c0_i32_0 = arith.constant 0 : i32
    %2 = arith.cmpi ne, %1, %c0_i32_0 : i32
    scf.if %2 {
      %cst_9 = arith.constant 0.000000e+00 : f32
      %13 = vector.broadcast %cst_9 : f32 to vector<16x128xf32>
      %c0_10 = arith.constant 0 : index
      %c0_11 = arith.constant 0 : index
      %14 = vector.load %arg5[%c0_10, %c0_11] : memref<16x128xf32, #tpu.memory_space<vmem>>, vector<16x128xf32>
      tpu.vector_store %arg5[%c0_10, %c0_11], %13 {strides = array<i32>} : memref<16x128xf32, #tpu.memory_space<vmem>>, vector<16x128xf32>,
    } else {
    }
    %c0 = arith.constant 0 : index
    %c0_1 = arith.constant 0 : index
    %3 = vector.load %arg5[%c0, %c0_1] : memref<16x128xf32, #tpu.memory_space<vmem>>, vector<16x128xf32>
    %c0_2 = arith.constant 0 : index
    %c0_3 = arith.constant 0 : index
    %4 = vector.load %arg2[%c0_2, %c0_3] : memref<16x128xf32, #tpu.memory_space<vmem>>, vector<16x128xf32>
    %5 = arith.truncf %4 : vector<16x128xf32> to vector<16x128xbf16>
    %c0_4 = arith.constant 0 : index
    %c0_5 = arith.constant 0 : index
    %6 = vector.load %arg3[%c0_4, %c0_5] : memref<128x128xbf16, #tpu.memory_space<vmem>>, vector<128x128xbf16>
    %cst = arith.constant dense<0.000000e+00> : vector<16x128xf32>
    %7 = tpu.matmul %5, %6, %cst {dimension_numbers = #tpu.dot_dimension_numbers<[1], [0], [0], [1], [0, 0, 1, 1], [], []>} : vector<16x128xbf16>, vector<128x128xbf16>, vector<16x128xf32> -> vector<16x128xf32>
    %8 = arith.addf %3, %7 : vector<16x128xf32>
    %c0_6 = arith.constant 0 : index
    %c0_7 = arith.constant 0 : index
    %9 = vector.load %arg5[%c0_6, %c0_7] : memref<16x128xf32, #tpu.memory_space<vmem>>, vector<16x128xf32>
    tpu.vector_store %arg5[%c0_6, %c0_7], %8 {strides = array<i32>} : memref<16x128xf32, #tpu.memory_space<vmem>>, vector<16x128xf32>,
    %c1_i32 = arith.constant 1 : i32
    %10 = arith.cmpi eq, %arg1, %c1_i32 : i32
    %11 = arith.extui %10 : i1 to i32
    %c0_i32_8 = arith.constant 0 : i32
    %12 = arith.cmpi ne, %11, %c0_i32_8 : i32
    scf.if %12 {
      %c0_9 = arith.constant 0 : index
      %c0_10 = arith.constant 0 : index
      %13 = vector.load %arg5[%c0_9, %c0_10] : memref<16x128xf32, #tpu.memory_space<vmem>>, vector<16x128xf32>
      %c0_11 = arith.constant 0 : index
      %c0_12 = arith.constant 0 : index
      %14 = vector.load %arg4[%c0_11, %c0_12] : memref<16x128xf32, #tpu.memory_space<vmem>>, vector<16x128xf32>
      tpu.vector_store %arg4[%c0_11, %c0_12], %13 {strides = array<i32>} : memref<16x128xf32, #tpu.memory_space<vmem>>, vector<16x128xf32>,
    } else {
    }
    return
  }
  func.func @transform_0(%arg0: i32, %arg1: i32) -> (i32, i32) {
    %c0_i32 = arith.constant 0 : i32
    %c0_i32_0 = arith.constant 0 : i32
    return %c0_i32, %arg1 : i32, i32
  }
  func.func @transform_1(%arg0: i32, %arg1: i32) -> (i32, i32) {
    %c0_i32 = arith.constant 0 : i32
    return %arg1, %arg0 : i32, i32
  }
  func.func @transform_2(%arg0: i32, %arg1: i32) -> (i32, i32) {
    %c0_i32 = arith.constant 0 : i32
    %c0_i32_0 = arith.constant 0 : i32
    return %c0_i32, %arg0 : i32, i32
  }
}

module attributes {stable_mosaic.version = 11 : i64} {
  func.func @_bn_scale_kernel(%arg0: i32, %arg1: memref<16x128xf32, #tpu.memory_space<vmem>>, %arg2: memref<16x128xf32, #tpu.memory_space<vmem>>) attributes {dimension_semantics = [#tpu.dimension_semantics<parallel>], iteration_bounds = array<i64: 2>, scalar_prefetch = 0 : i64, scratch_operands = 0 : i64, tpu.core_type = #tpu.core_type<tc>, window_params = [{transform_indices = @transform_0, window_bounds = array<i64: 16, 128>}, {transform_indices = @transform_1, window_bounds = array<i64: 16, 128>}]} {
    %c0 = arith.constant 0 : index
    %c0_0 = arith.constant 0 : index
    %0 = vector.load %arg1[%c0, %c0_0] : memref<16x128xf32, #tpu.memory_space<vmem>>, vector<16x128xf32>
    %1 = vector.shape_cast %0 : vector<16x128xf32> to vector<2x8x128xf32>
    %cst = arith.constant dense<0.000000e+00> : vector<2x128xf32>
    %2 = vector.multi_reduction <add>, %1, %cst [1] : vector<2x8x128xf32> to vector<2x128xf32>
    %3 = vector.shape_cast %2 : vector<2x128xf32> to vector<2x1x128xf32>
    %cst_1 = arith.constant 8.000000e+00 : f32
    %4 = vector.broadcast %cst_1 : f32 to vector<2x1x128xf32>
    %5 = arith.divf %3, %4 : vector<2x1x128xf32>
    %6 = vector.broadcast %5 : vector<2x1x128xf32> to vector<2x8x128xf32>
    %7 = arith.subf %1, %6 : vector<2x8x128xf32>
    %8 = arith.mulf %7, %7 : vector<2x8x128xf32>
    %cst_2 = arith.constant dense<0.000000e+00> : vector<2x128xf32>
    %9 = vector.multi_reduction <add>, %8, %cst_2 [1] : vector<2x8x128xf32> to vector<2x128xf32>
    %10 = vector.shape_cast %9 : vector<2x128xf32> to vector<2x1x128xf32>
    %cst_3 = arith.constant 8.000000e+00 : f32
    %11 = vector.broadcast %cst_3 : f32 to vector<2x1x128xf32>
    %12 = arith.divf %10, %11 : vector<2x1x128xf32>
    %cst_4 = arith.constant 9.99999974E-6 : f32
    %13 = vector.broadcast %cst_4 : f32 to vector<2x1x128xf32>
    %14 = arith.addf %12, %13 : vector<2x1x128xf32>
    %15 = math.rsqrt %14 : vector<2x1x128xf32>
    %cst_5 = arith.constant 0.353553385 : f32
    %16 = vector.broadcast %cst_5 : f32 to vector<2x1x128xf32>
    %17 = arith.mulf %15, %16 : vector<2x1x128xf32>
    %18 = vector.broadcast %5 : vector<2x1x128xf32> to vector<2x8x128xf32>
    %19 = arith.subf %1, %18 : vector<2x8x128xf32>
    %20 = vector.broadcast %17 : vector<2x1x128xf32> to vector<2x8x128xf32>
    %21 = arith.mulf %19, %20 : vector<2x8x128xf32>
    %22 = vector.shape_cast %21 : vector<2x8x128xf32> to vector<16x128xf32>
    %c0_6 = arith.constant 0 : index
    %c0_7 = arith.constant 0 : index
    %23 = vector.load %arg2[%c0_6, %c0_7] : memref<16x128xf32, #tpu.memory_space<vmem>>, vector<16x128xf32>
    tpu.vector_store %arg2[%c0_6, %c0_7], %22 {strides = array<i32>} : memref<16x128xf32, #tpu.memory_space<vmem>>, vector<16x128xf32>,
    return
  }
  func.func @transform_0(%arg0: i32) -> (i32, i32) {
    %c0_i32 = arith.constant 0 : i32
    %c0_i32_0 = arith.constant 0 : i32
    return %c0_i32, %arg0 : i32, i32
  }
  func.func @transform_1(%arg0: i32) -> (i32, i32) {
    %c0_i32 = arith.constant 0 : i32
    %c0_i32_0 = arith.constant 0 : i32
    return %c0_i32, %arg0 : i32, i32
  }
}

module attributes {stable_mosaic.version = 11 : i64} {
  func.func @_loss_tile_kernel(%arg0: i32, %arg1: i32, %arg2: memref<8x128xf32, #tpu.memory_space<vmem>>, %arg3: memref<8x128xf32, #tpu.memory_space<vmem>>, %arg4: memref<1x1xf32, #tpu.memory_space<smem>>) attributes {dimension_semantics = [#tpu.dimension_semantics<arbitrary>, #tpu.dimension_semantics<arbitrary>], iteration_bounds = array<i64: 2, 2>, scalar_prefetch = 0 : i64, scratch_operands = 0 : i64, tpu.core_type = #tpu.core_type<tc>, window_params = [{transform_indices = @transform_0, window_bounds = array<i64: 8, 128>}, {transform_indices = @transform_1, window_bounds = array<i64: 8, 128>}, {transform_indices = @transform_2, window_bounds = array<i64: 1, 1>}]} {
    %c0_i32 = arith.constant 0 : i32
    %0 = arith.cmpi eq, %arg0, %c0_i32 : i32
    %c0_i32_0 = arith.constant 0 : i32
    %1 = arith.cmpi eq, %arg1, %c0_i32_0 : i32
    %2 = arith.andi %0, %1 : i1
    %3 = arith.extui %2 : i1 to i32
    %c0_i32_1 = arith.constant 0 : i32
    %4 = arith.cmpi ne, %3, %c0_i32_1 : i32
    scf.if %4 {
      %cst_12 = arith.constant 0.000000e+00 : f32
      %c0_13 = arith.constant 0 : index
      %c0_14 = arith.constant 0 : index
      %22 = memref.load %arg4[%c0_13, %c0_14] : memref<1x1xf32, #tpu.memory_space<smem>>
      memref.store %cst_12, %arg4[%c0_13, %c0_14] : memref<1x1xf32, #tpu.memory_space<smem>>
    } else {
    }
    %c0 = arith.constant 0 : index
    %c0_2 = arith.constant 0 : index
    %5 = vector.load %arg2[%c0, %c0_2] : memref<8x128xf32, #tpu.memory_space<vmem>>, vector<8x128xf32>
    %6 = arith.truncf %5 : vector<8x128xf32> to vector<8x128xbf16>
    %c0_3 = arith.constant 0 : index
    %c0_4 = arith.constant 0 : index
    %7 = vector.load %arg3[%c0_3, %c0_4] : memref<8x128xf32, #tpu.memory_space<vmem>>, vector<8x128xf32>
    %8 = arith.truncf %7 : vector<8x128xf32> to vector<8x128xbf16>
    %cst = arith.constant dense<0.000000e+00> : vector<128x128xf32>
    %9 = tpu.matmul %6, %8, %cst {dimension_numbers = #tpu.dot_dimension_numbers<[0], [0], [1], [1], [0, 1, 1, 1], [], []>} : vector<8x128xbf16>, vector<8x128xbf16>, vector<128x128xf32> -> vector<128x128xf32>
    %c0_5 = arith.constant 0 : index
    %c0_6 = arith.constant 0 : index
    %10 = memref.load %arg4[%c0_5, %c0_6] : memref<1x1xf32, #tpu.memory_space<smem>>
    %11 = arith.mulf %9, %9 : vector<128x128xf32>
    %12 = vector.shape_cast %11 : vector<128x128xf32> to vector<1x128x128xf32>
    %cst_7 = arith.constant dense<0.000000e+00> : vector<1xf32>
    %13 = vector.multi_reduction <add>, %12, %cst_7 [1, 2] : vector<1x128x128xf32> to vector<1xf32>
    %14 = vector.shape_cast %13 : vector<1xf32> to vector<1x1x1xf32>
    %15 = vector.extract %14[0, 0, 0] : f32 from vector<1x1x1xf32>
    %cst_8 = arith.constant 5.100000e-03 : f32
    %16 = arith.mulf %cst_8, %15 : f32
    %17 = arith.addf %10, %16 : f32
    %c0_9 = arith.constant 0 : index
    %c0_10 = arith.constant 0 : index
    %18 = memref.load %arg4[%c0_9, %c0_10] : memref<1x1xf32, #tpu.memory_space<smem>>
    memref.store %17, %arg4[%c0_9, %c0_10] : memref<1x1xf32, #tpu.memory_space<smem>>
    %19 = arith.cmpi eq, %arg0, %arg1 : i32
    %20 = arith.extui %19 : i1 to i32
    %c0_i32_11 = arith.constant 0 : i32
    %21 = arith.cmpi ne, %20, %c0_i32_11 : i32
    scf.if %21 {
      %22 = tpu.iota {dimensions = array<i32: 0>} : vector<128x128xi32>
      %23 = tpu.iota {dimensions = array<i32: 1>} : vector<128x128xi32>
      %24 = arith.cmpi eq, %22, %23 : vector<128x128xi32>
      %c0_12 = arith.constant 0 : index
      %c0_13 = arith.constant 0 : index
      %25 = memref.load %arg4[%c0_12, %c0_13] : memref<1x1xf32, #tpu.memory_space<smem>>
      %cst_14 = arith.constant 1.000000e+00 : f32
      %26 = vector.broadcast %cst_14 : f32 to vector<128x128xf32>
      %27 = arith.subf %9, %26 : vector<128x128xf32>
      %28 = arith.mulf %27, %27 : vector<128x128xf32>
      %29 = arith.mulf %9, %9 : vector<128x128xf32>
      %cst_15 = arith.constant 5.100000e-03 : f32
      %30 = vector.broadcast %cst_15 : f32 to vector<128x128xf32>
      %31 = arith.mulf %30, %29 : vector<128x128xf32>
      %32 = arith.subf %28, %31 : vector<128x128xf32>
      %cst_16 = arith.constant 0.000000e+00 : f32
      %33 = vector.broadcast %cst_16 : f32 to vector<128x128xf32>
      %34 = arith.select %24, %32, %33 : vector<128x128xi1>, vector<128x128xf32>
      %35 = vector.shape_cast %34 : vector<128x128xf32> to vector<1x128x128xf32>
      %cst_17 = arith.constant dense<0.000000e+00> : vector<1xf32>
      %36 = vector.multi_reduction <add>, %35, %cst_17 [1, 2] : vector<1x128x128xf32> to vector<1xf32>
      %37 = vector.shape_cast %36 : vector<1xf32> to vector<1x1x1xf32>
      %38 = vector.extract %37[0, 0, 0] : f32 from vector<1x1x1xf32>
      %39 = arith.addf %25, %38 : f32
      %c0_18 = arith.constant 0 : index
      %c0_19 = arith.constant 0 : index
      %40 = memref.load %arg4[%c0_18, %c0_19] : memref<1x1xf32, #tpu.memory_space<smem>>
      memref.store %39, %arg4[%c0_18, %c0_19] : memref<1x1xf32, #tpu.memory_space<smem>>
    } else {
    }
    return
  }
  func.func @transform_0(%arg0: i32, %arg1: i32) -> (i32, i32) {
    %c0_i32 = arith.constant 0 : i32
    %c0_i32_0 = arith.constant 0 : i32
    return %c0_i32, %arg0 : i32, i32
  }
  func.func @transform_1(%arg0: i32, %arg1: i32) -> (i32, i32) {
    %c1_i32 = arith.constant 1 : i32
    %c0_i32 = arith.constant 0 : i32
    return %c1_i32, %arg1 : i32, i32
  }
  func.func @transform_2(%arg0: i32, %arg1: i32) -> (i32, i32) {
    %c0_i32 = arith.constant 0 : i32
    %c0_i32_0 = arith.constant 0 : i32
    %c0_i32_1 = arith.constant 0 : i32
    return %c0_i32, %c0_i32_0 : i32, i32
  }
}

</mosaic_0001>

<bundles_post_ra>
// kernel: barlow_twins_forward.6
= control target key start
LH: loop header
LB: loop body
LE: loop exit
PB: predicated region body
PF: predicated region fallthrough
CT: control target
= control target key end

     0   :  { %s695_s9 = smov 0   ;;  %s800_s0 = inlined_call_operand.vmem [shape: f32[256,64], index: 0, kind: input, shape index: {}]   ;;  %s801_s1 = inlined_call_operand.vmem [shape: bf16[64,256], index: 1, kind: input, shape index: {}]   ;;  %s802_s2 = inlined_call_operand.vmem [shape: f32[16,256], index: 2, kind: output, shape index: {}]  }
   0x1 LB: > { %s701_s10 = sadd.s32 4294967295, %s677_s9   ;;  %p618_p0 = scmp.ge.s32.totalorder %s677_s9, 1  ;;  %s677_s9 = sphi %s695_s9, %s12_s9  }
   0x2   : > { %p113_p1 = scmp.lt.s32.totalorder %s677_s9, 3 }
   0x4   : > { %p114_p2 = pnand %p618_p0, %p113_p1 }
   0x5   : > { %v659_v0 = vld [vmem:[%s801_s1 + $0x4] ss:$8 sps:$4 sm:$0xff] (!%p114_p2)   ;;  %s619_s13 = sshll.u32 (!%p114_p2), %s701_s10, 4  ;;  %v661_v1 = vld [vmem:[%s801_s1] ss:$8 sps:$4 sm:$0xff] (!%p114_p2)   ;;  %v679_v2 = vmov (!%p114_p2), 0  }
   0x6   : > { %117 = sbr.rel (%p114_p2) target bundleno = 287 (0x11f), region = 28  ;;  %276 = vmatprep.mubr.bf16.mxu0 (!%p114_p2), %v679_v2  ;;  %316 = vmatprep.mubr.bf16.mxu1 (!%p114_p2), %v679_v2  ;;  %p136_p3 = scmp.lt.s32.totalorder (!%p114_p2), %s619_s13, 31  ;;  %v662_v3 = vld [vmem:[%s801_s1 + $0x14] ss:$8 sps:$4 sm:$0xff] (!%p114_p2)   ;;  %v664_v4 = vld [vmem:[%s801_s1 + $0x10] ss:$8 sps:$4 sm:$0xff] (!%p114_p2)  }
   0x7   : > { %244 = vmatprep.subr.bf16.mxu0 (!%p114_p2), %v659_v0  ;;  %642 = vmatprep.subr.bf16.mxu1 (!%p114_p2), %v659_v0  ;;  %v665_v5 = vld [vmem:[%s801_s1 + $0x24] ss:$8 sps:$4 sm:$0xff] (!%p114_p2)   ;;  %v667_v6 = vld [vmem:[%s801_s1 + $0x20] ss:$8 sps:$4 sm:$0xff] (!%p114_p2)   ;;  %v668_v7 = vld [vmem:[%s801_s1 + $0x34] ss:$8 sps:$4 sm:$0xff] (!%p114_p2)  }
   0x8   : > { %245 = vmatpush1.bf16.msra.mxu0 (!%p114_p2), %v661_v1  ;;  %646 = vmatpush1.bf16.msra.mxu1 (!%p114_p2), %v661_v1  ;;  %v670_v8 = vld [vmem:[%s801_s1 + $0x30] ss:$8 sps:$4 sm:$0xff] (!%p114_p2)   ;;  %vm219_vm0 = vcmask (!%p114_p2), 523264   ;;  %vm534_vm1 = vcmask (!%p114_p2), 1041409   ;;  %vm536_vm2 = vcmask (!%p114_p2), 1042434   ;;  %p141_p4 = scmp.lt.s32.totalorder (!%p114_p2), %s701_s10, 1 }
   0x9   : > { %246 = vmatprep.subr.bf16.mxu0 (!%p114_p2), %v662_v3  ;;  %643 = vmatprep.subr.bf16.mxu1 (!%p114_p2), %v662_v3  ;;  %vm538_vm3 = vcmask (!%p114_p2), 1043459   ;;  %vm540_vm4 = vcmask (!%p114_p2), 1044484   ;;  %vm542_vm5 = vcmask (!%p114_p2), 1045509   ;;  %vm544_vm6 = vcmask (!%p114_p2), 1046534  }
   0xa   : > { %vm546_vm7 = vcmask (!%p114_p2), 1047559  }
   0xc   : > { %247 = vmatpush1.bf16.msra.mxu0 (!%p114_p2), %v664_v4  ;;  %647 = vmatpush1.bf16.msra.mxu1 (!%p114_p2), %v664_v4 }
   0xd   : > { %s804_s13 = smov (!%p136_p3, %s619_s13), 31  ;;  %248 = vmatprep.subr.bf16.mxu0 %v665_v5  ;;  %644 = vmatprep.subr.bf16.mxu1 %v665_v5  ;;  %s806_s10 = smov (!%p141_p4, %s701_s10), 1 }
   0xe   : > { %s620_s22 = sshll.u32 %s804_s13, 3  ;;  %s641_s4 = sshll.u32 %s806_s10, 4 }
   0xf   : > { %s727_s27 = scalar_lea.vmem %s800_s0, %s620_s22  ;;  %s145_s7 = scalar_lea.vmem %s802_s2, %s641_s4 }
  0x10   : > { %v147_v9 = vld [vmem:[%s727_s27] sm:$0xff]  ;;  %249 = vmatpush1.bf16.msra.mxu0 %v667_v6  ;;  %648 = vmatpush1.bf16.msra.mxu1 %v667_v6  ;;  %v148_v10 = vld [vmem:[%s727_s27 + $0x8] sm:$0xff]  ;;  %v149_v15 = vld [vmem:[%s727_s27 + $0x10] sm:$0xff] }
  0x11   : > { %v155_v11 = vld [vmem:[%s727_s27 + $0x40] sm:$0xff]  ;;  %v156_v12 = vld [vmem:[%s727_s27 + $0x48] sm:$0xff]  ;;  %250 = vmatprep.subr.bf16.mxu0 %v668_v7  ;;  %645 = vmatprep.subr.bf16.mxu1 %v668_v7  ;;  %v163_v13 = vpack.c.bf16 %v148_v10, %v147_v9  ;;  %v150_v16 = vld [vmem:[%s727_s27 + $0x18] sm:$0xff] }
  0x12   : > { %v167_v14 = vpack.c.bf16 %v156_v12, %v155_v11  ;;  %v157_v17 = vld [vmem:[%s727_s27 + $0x50] sm:$0xff]  ;;  %v158_v18 = vld [vmem:[%s727_s27 + $0x58] sm:$0xff]  ;;  %v164_v19 = vpack.c.bf16 %v150_v16, %v149_v15  ;;  %v151_v21 = vld [vmem:[%s727_s27 + $0x20] sm:$0xff] }
  0x13   : > { %v168_v20 = vpack.c.bf16 %v158_v18, %v157_v17  ;;  %v152_v22 = vld [vmem:[%s727_s27 + $0x28] sm:$0xff]  ;;  %v159_v23 = vld [vmem:[%s727_s27 + $0x60] sm:$0xff]  ;;  %v153_v27 = vld [vmem:[%s727_s27 + $0x30] sm:$0xff] }
  0x14   : > { %251 = vmatpush1.bf16.msra.mxu0 %v670_v8  ;;  %649 = vmatpush1.bf16.msra.mxu1 %v670_v8  ;;  %v160_v24 = vld [vmem:[%s727_s27 + $0x68] sm:$0xff]  ;;  %v165_v25 = vpack.c.bf16 %v152_v22, %v151_v21  ;;  %v154_v28 = vld [vmem:[%s727_s27 + $0x38] sm:$0xff]  ;;  %v161_v29 = vld [vmem:[%s727_s27 + $0x70] sm:$0xff] }
  0x15   : > { %v169_v26 = vpack.c.bf16 %v160_v24, %v159_v23  ;;  %v162_v30 = vld [vmem:[%s727_s27 + $0x78] sm:$0xff]  ;;  %v166_v31 = vpack.c.bf16 %v154_v28, %v153_v27 }
  0x16   : > { %v170_v32 = vpack.c.bf16 %v162_v30, %v161_v29 }
  0x17   : > { %631 = vmatmul.mubr.msk.bf16.vlgmr.msra.gmra.mrb[0].mxu0 %vm219_vm0, %v163_v13  ;;  %635 = vmatmul.mubr.msk.bf16.vlgmr.msra.gmra.mrb[0].mxu1 %vm219_vm0, %v167_v14 }
  0x18   : > { %286 = vmatprep.mubr.bf16.mxu0 %v679_v2  ;;  %326 = vmatprep.mubr.bf16.mxu1 %v679_v2 }
  0x1f   : > { %632 = vmatmul.mubr.msk.bf16.gmra.mrb[4].mxu0 %vm219_vm0, %v164_v19  ;;  %636 = vmatmul.mubr.msk.bf16.gmra.mrb[4].mxu1 %vm219_vm0, %v168_v20 }
  0x20   : > { %296 = vmatprep.mubr.bf16.mxu0 %v679_v2  ;;  %336 = vmatprep.mubr.bf16.mxu1 %v679_v2 }
  0x27   : > { %633 = vmatmul.mubr.msk.bf16.gmra.mrb[8].mxu0 %vm219_vm0, %v165_v25  ;;  %637 = vmatmul.mubr.msk.bf16.gmra.mrb[8].mxu1 %vm219_vm0, %v169_v26 }
  0x28   : > { %306 = vmatprep.mubr.bf16.mxu0 %v679_v2  ;;  %346 = vmatprep.mubr.bf16.mxu1 %v679_v2 }
  0x2f   : > { %634 = vmatmul.mubr.msk.bf16.gmra.mrb[12].mxu0 %vm219_vm0, %v166_v31  ;;  %638 = vmatmul.mubr.msk.bf16.gmra.mrb[12].mxu1 %vm219_vm0, %v170_v32 }
  0xea   : > { %v278_v33 = vpop.f32.mrb[0].mxu0  ;;  %v318_v34 = vpop.f32.mrb[0].mxu1 }
  0xeb   : > { %v373_v35 = vmax.f32 %v318_v34, 0.0  ;;  %v280_v36 = vpop.f32.mrb[1].mxu0  ;;  %v320_v37 = vpop.f32.mrb[1].mxu1  ;;  %v357_v41 = vmax.f32 %v278_v33, 0.0 }
  0xec   : > { %v374_v38 = vmax.f32 %v320_v37, 0.0  ;;  %v282_v39 = vpop.f32.mrb[2].mxu0  ;;  %v322_v40 = vpop.f32.mrb[2].mxu1  ;;  %v358_v46 = vmax.f32 %v280_v36, 0.0 }
  0xed   : > { %v359_v42 = vmax.f32 %v282_v39, 0.0  ;;  %v375_v43 = vmax.f32 %v322_v40, 0.0  ;;  %v284_v44 = vpop.f32.mrb[3].mxu0  ;;  %v324_v45 = vpop.f32.mrb[3].mxu1 }
  0xee   : > { %v360_v47 = vmax.f32 %v284_v44, 0.0  ;;  %v376_v48 = vmax.f32 %v324_v45, 0.0 }
  0xef   : > { %v389_v49 = vadd.f32 %v359_v42, %v357_v41  ;;  %v445_v50 = vadd.f32 %v375_v43, %v373_v35 }
  0xf0   : > { %v396_v51 = vadd.f32 %v360_v47, %v358_v46  ;;  %v452_v52 = vadd.f32 %v376_v48, %v374_v38 }
  0xf1   : > { %v390_v53 = vrot.slane %v389_v49, 4  ;;  %v446_v54 = vrot.slane %v445_v50, 4 }
  0xf2   : > { %v397_v55 = vrot.slane %v396_v51, 4  ;;  %v288_v56 = vpop.f32.mrb[4].mxu0  ;;  %v328_v57 = vpop.f32.mrb[4].mxu1  ;;  %v453_v59 = vrot.slane %v452_v52, 4 }
  0xf3   : > { %v391_v58 = vadd.f32 %v390_v53, %v389_v49  ;;  %v377_v60 = vmax.f32 %v328_v57, 0.0  ;;  %v290_v61 = vpop.f32.mrb[5].mxu0  ;;  %v330_v62 = vpop.f32.mrb[5].mxu1  ;;  %v447_v63 = vadd.f32 %v446_v54, %v445_v50  ;;  %v361_v5 = vmax.f32 %v288_v56, 0.0 }
  0xf4   : > { %v398_v0 = vadd.f32 %v397_v55, %v396_v51  ;;  %v378_v1 = vmax.f32 %v330_v62, 0.0  ;;  %v292_v2 = vpop.f32.mrb[6].mxu0  ;;  %v332_v3 = vpop.f32.mrb[6].mxu1  ;;  %v362_v11 = vmax.f32 %v290_v61, 0.0  ;;  %v454_v14 = vadd.f32 %v453_v59, %v452_v52 }
  0xf5   : > { %v392_v4 = vrot.slane %v391_v58, 2  ;;  %v363_v6 = vmax.f32 %v292_v2, 0.0  ;;  %v379_v7 = vmax.f32 %v332_v3, 0.0  ;;  %v294_v8 = vpop.f32.mrb[7].mxu0  ;;  %v334_v9 = vpop.f32.mrb[7].mxu1  ;;  %v448_v22 = vrot.slane %v447_v63, 2 }
  0xf6   : > { %v399_v10 = vrot.slane %v398_v0, 2  ;;  %v364_v12 = vmax.f32 %v294_v8, 0.0  ;;  %v380_v13 = vmax.f32 %v334_v9, 0.0  ;;  %v455_v26 = vrot.slane %v454_v14, 2 }
  0xf7   : > { %v403_v15 = vadd.f32 %v363_v6, %v361_v5  ;;  %v459_v16 = vadd.f32 %v379_v7, %v377_v60  ;;  %v393_v17 = vadd.f32 %v392_v4, %v391_v58  ;;  %v761_v38 = vadd.f32 %v448_v22, %v447_v63 }
  0xf8   : > { %v400_v18 = vadd.f32 %v399_v10, %v398_v0  ;;  %v410_v19 = vadd.f32 %v364_v12, %v362_v11  ;;  %v759_v20 = vadd.f32 %v380_v13, %v378_v1  ;;  %v763_v40 = vadd.f32 %v455_v26, %v454_v14 }
  0xf9   : > { %v404_v21 = vrot.slane %v403_v15, 4  ;;  %v394_v30 = vrot.slane %v393_v17, 1  ;;  %v460_v42 = vrot.slane %v459_v16, 4 }
  0xfa   : > { %v411_v23 = vrot.slane %v410_v19, 4  ;;  %v298_v24 = vpop.f32.mrb[8].mxu0  ;;  %v338_v25 = vpop.f32.mrb[8].mxu1  ;;  %v401_v31 = vrot.slane %v400_v18, 1  ;;  %v467_v59 = vrot.slane %v759_v20, 4 }
  0xfb   : > { %v405_v27 = vadd.f32 %v404_v21, %v403_v15  ;;  %v300_v28 = vpop.f32.mrb[9].mxu0  ;;  %v340_v29 = vpop.f32.mrb[9].mxu1  ;;  %v381_v43 = vmax.f32 %v338_v25, 0.0  ;;  %v395_v44 = vadd.f32 %v394_v30, %v393_v17  ;;  %v365_v49 = vmax.f32 %v298_v24, 0.0 }
  0xfc   : > { %v412_v32 = vadd.f32 %v411_v23, %v410_v19  ;;  %v302_v33 = vpop.f32.mrb[10].mxu0  ;;  %v342_v34 = vpop.f32.mrb[10].mxu1  ;;  %v402_v45 = vadd.f32 %v401_v31, %v400_v18  ;;  %v382_v47 = vmax.f32 %v340_v29, 0.0  ;;  %v366_v53 = vmax.f32 %v300_v28, 0.0 }
  0xfd   : > { %v406_v35 = vrot.slane %v405_v27, 2  ;;  %v304_v36 = vpop.f32.mrb[11].mxu0  ;;  %v344_v37 = vpop.f32.mrb[11].mxu1  ;;  %v367_v50 = vmax.f32 %v302_v33, 0.0  ;;  %v383_v51 = vmax.f32 %v342_v34, 0.0  ;;  %v461_v0 = vadd.f32 %v460_v42, %v459_v16 }
  0xfe   : > { %v413_v39 = vrot.slane %v412_v32, 2  ;;  %v368_v54 = vmax.f32 %v304_v36, 0.0  ;;  %v384_v55 = vmax.f32 %v344_v37, 0.0  ;;  %v502_v6 = vmul.f32 0.0625, %v395_v44 }
  0xff   : > { %v407_v41 = vadd.f32 %v406_v35, %v405_v27  ;;  %v417_v60 = vadd.f32 %v367_v50, %v365_v49  ;;  %v473_v61 = vadd.f32 %v383_v51, %v381_v43  ;;  %v503_v12 = vmul.f32 0.0625, %v402_v45 }
 0x100   : > { %v414_v46 = vadd.f32 %v413_v39, %v412_v32  ;;  %v424_v2 = vadd.f32 %v368_v54, %v366_v53  ;;  %v480_v3 = vadd.f32 %v384_v55, %v382_v47  ;;  %v450_v17 = vrot.slane %v761_v38, 1 }
 0x101   : > { %v408_v48 = vrot.slane %v407_v41, 1  ;;  %v418_v8 = vrot.slane %v417_v60, 4  ;;  %v474_v9 = vrot.slane %v473_v61, 4  ;;  %v468_v16 = vadd.f32 %v467_v59, %v759_v20 }
 0x102   : > { %v415_v52 = vrot.slane %v414_v46, 1  ;;  %v308_v56 = vpop.f32.mrb[12].mxu0  ;;  %v348_v57 = vpop.f32.mrb[12].mxu1  ;;  %v425_v14 = vrot.slane %v424_v2, 4  ;;  %v481_v15 = vrot.slane %v480_v3, 4  ;;  %v462_v21 = vrot.slane %v461_v0, 2 }
 0x103   : > { %v409_v58 = vadd.f32 %v408_v48, %v407_v41  ;;  %v310_v62 = vpop.f32.mrb[13].mxu0  ;;  %v350_v63 = vpop.f32.mrb[13].mxu1  ;;  %v419_v19 = vadd.f32 %v418_v8, %v417_v60  ;;  %v385_v24 = vmax.f32 %v348_v57, 0.0  ;;  %v475_v26 = vadd.f32 %v474_v9, %v473_v61 }
 0x104   : > { %v416_v1 = vadd.f32 %v415_v52, %v414_v46  ;;  %v312_v4 = vpop.f32.mrb[14].mxu0  ;;  %v352_v5 = vpop.f32.mrb[14].mxu1  ;;  %v426_v23 = vadd.f32 %v425_v14, %v424_v2  ;;  %v369_v27 = vmax.f32 %v308_v56, 0.0  ;;  %v386_v28 = vmax.f32 %v350_v63, 0.0 }
 0x105   : > { %v504_v7 = vmul.f32 0.0625, %v409_v58  ;;  %v314_v10 = vpop.f32.mrb[15].mxu0  ;;  %v354_v11 = vpop.f32.mrb[15].mxu1  ;;  %v420_v25 = vrot.slane %v419_v19, 2  ;;  %v482_v30 = vadd.f32 %v481_v15, %v480_v3  ;;  %v371_v31 = vmax.f32 %v312_v4, 0.0 }
 0x106   : > { %v505_v13 = vmul.f32 0.0625, %v416_v1  ;;  %v427_v29 = vrot.slane %v426_v23, 2  ;;  %v387_v32 = vmax.f32 %v352_v5, 0.0  ;;  %v370_v34 = vmax.f32 %v310_v62, 0.0 }
 0x107   : > { %v535_v18 = vsel %vm534_vm1, %v504_v7, %v502_v6  ;;  %v421_v33 = vadd.f32 %v420_v25, %v419_v19  ;;  %v372_v35 = vmax.f32 %v314_v10, 0.0  ;;  %v388_v36 = vmax.f32 %v354_v11, 0.0 }
 0x108   : > { %v548_v22 = vsel %vm534_vm1, %v505_v13, %v503_v12  ;;  %v469_v20 = vrot.slane %v468_v16, 2  ;;  %v428_v37 = vadd.f32 %v427_v29, %v426_v23  ;;  %v431_v39 = vadd.f32 %v371_v31, %v369_v27 }
 0x109   : > { %v487_v41 = vadd.f32 %v387_v32, %v385_v24  ;;  %v422_v42 = vrot.slane %v421_v33, 1  ;;  %v476_v43 = vrot.slane %v475_v26, 2  ;;  %v438_v44 = vadd.f32 %v372_v35, %v370_v34 }
 0x10a   : > { %v494_v45 = vadd.f32 %v388_v36, %v386_v28  ;;  %v429_v46 = vrot.slane %v428_v37, 1  ;;  %v483_v47 = vrot.slane %v482_v30, 2  ;;  %v432_v48 = vrot.slane %v431_v39, 4 }
 0x10b   : > { %v488_v49 = vrot.slane %v487_v41, 4  ;;  %v463_v50 = vadd.f32 %v462_v21, %v461_v0  ;;  %v423_v51 = vadd.f32 %v422_v42, %v421_v33  ;;  %v439_v52 = vrot.slane %v438_v44, 4 }
 0x10c   : > { %v495_v53 = vrot.slane %v494_v45, 4  ;;  %v470_v54 = vadd.f32 %v469_v20, %v468_v16  ;;  %v430_v55 = vadd.f32 %v429_v46, %v428_v37  ;;  %v433_v56 = vadd.f32 %v432_v48, %v431_v39 }
 0x10d   : > { %v489_v57 = vadd.f32 %v488_v49, %v487_v41  ;;  %v506_v58 = vmul.f32 0.0625, %v423_v51  ;;  %v477_v59 = vadd.f32 %v476_v43, %v475_v26  ;;  %v440_v60 = vadd.f32 %v439_v52, %v438_v44 }
 0x10e   : > { %v496_v61 = vadd.f32 %v495_v53, %v494_v45  ;;  %v507_v62 = vmul.f32 0.0625, %v430_v55  ;;  %v484_v63 = vadd.f32 %v483_v47, %v482_v30  ;;  %v434_v1 = vrot.slane %v433_v56, 2 }
 0x10f   : > { %v490_v2 = vrot.slane %v489_v57, 2  ;;  %v457_v3 = vrot.slane %v763_v40, 1  ;;  %v537_v0 = vsel %vm536_vm2, %v506_v58, %v535_v18  ;;  %v441_v4 = vrot.slane %v440_v60, 2 }
 0x110   : > { %v497_v5 = vrot.slane %v496_v61, 2  ;;  %v464_v6 = vrot.slane %v463_v50, 1  ;;  %v549_v7 = vsel %vm536_vm2, %v507_v62, %v548_v22  ;;  %v435_v8 = vadd.f32 %v434_v1, %v433_v56 }
 0x111   : > { %v491_v9 = vadd.f32 %v490_v2, %v489_v57  ;;  %v471_v10 = vrot.slane %v470_v54, 1  ;;  %v478_v11 = vrot.slane %v477_v59, 1  ;;  %v442_v12 = vadd.f32 %v441_v4, %v440_v60 }
 0x112   : > { %v498_v13 = vadd.f32 %v497_v5, %v496_v61  ;;  %v485_v14 = vrot.slane %v484_v63, 1  ;;  %v436_v15 = vrot.slane %v435_v8, 1  ;;  %v451_v18 = vadd.f32 %v450_v17, %v761_v38 }
 0x113   : > { %v492_v16 = vrot.slane %v491_v9, 1  ;;  %v443_v19 = vrot.slane %v442_v12, 1  ;;  %v458_v22 = vadd.f32 %v457_v3, %v763_v40  ;;  %v465_v23 = vadd.f32 %v464_v6, %v463_v50 }
 0x114   : > { %v499_v21 = vrot.slane %v498_v13, 1  ;;  %v437_v24 = vadd.f32 %v436_v15, %v435_v8  ;;  %v472_v25 = vadd.f32 %v471_v10, %v470_v54  ;;  %v479_v26 = vadd.f32 %v478_v11, %v477_v59 }
 0x115   : > { %v444_v27 = vadd.f32 %v443_v19, %v442_v12  ;;  %v486_v28 = vadd.f32 %v485_v14, %v484_v63  ;;  %v493_v30 = vadd.f32 %v492_v16, %v491_v9  ;;  %v510_v38 = vmul.f32 0.0625, %v451_v18 }
 0x116   : > { %v508_v29 = vmul.f32 0.0625, %v437_v24  ;;  %v500_v31 = vadd.f32 %v499_v21, %v498_v13  ;;  %v511_v32 = vmul.f32 0.0625, %v458_v22  ;;  %v512_v33 = vmul.f32 0.0625, %v465_v23 }
 0x117   : > { %v509_v17 = vmul.f32 0.0625, %v444_v27  ;;  %v513_v34 = vmul.f32 0.0625, %v472_v25  ;;  %v514_v35 = vmul.f32 0.0625, %v479_v26  ;;  %v515_v37 = vmul.f32 0.0625, %v486_v28 }
 0x118   : > { %v539_v40 = vsel %vm538_vm3, %v508_v29, %v537_v0  ;;  %v516_v39 = vmul.f32 0.0625, %v493_v30  ;;  %v517_v44 = vmul.f32 0.0625, %v500_v31 }
 0x119   : > { %v541_v36 = vsel %vm540_vm4, %v510_v38, %v539_v40  ;;  %v550_v20 = vsel %vm538_vm3, %v509_v17, %v549_v7 }
 0x11a   : > { %v543_v41 = vsel %vm542_vm5, %v512_v33, %v541_v36  ;;  %v551_v42 = vsel %vm540_vm4, %v511_v32, %v550_v20 }
 0x11b   : > { %v545_v43 = vsel %vm544_vm6, %v514_v35, %v543_v41  ;;  %v552_v45 = vsel %vm542_vm5, %v513_v34, %v551_v42 }
 0x11c   : > { %v547_v46 = vsel %vm546_vm7, %v516_v39, %v545_v43  ;;  %v553_v47 = vsel %vm544_vm6, %v515_v37, %v552_v45 }
 0x11d   : > { %557 = vst [vmem:[%s145_s7] sm:$0xff] %v547_v46  ;;  %v554_v48 = vsel %vm546_vm7, %v517_v44, %v553_v47 }
 0x11e   : > { %558 = vst [vmem:[%s145_s7 + $0x8] sm:$0xff] %v554_v48 }
 0x11f PF: > { %s12_s9 = sadd.s32 1, %s677_s9  }
 0x120   : > { %p9_p5 = scmp.ge.s32.totalorder %s12_s9, 4  }
 0x122   :  { %11 = sbr.rel (!%p9_p5) target bundleno = 1 (0x1), region = 58 }

// kernel: barlow_twins_forward.7
= control target key start
LH: loop header
LB: loop body
LE: loop exit
PB: predicated region body
PF: predicated region fallthrough
CT: control target
= control target key end

     0   :  { %s1029_s15 = smov 0   ;;  %s1031_s16 = smov 0   ;;  %s1252_s0 = inlined_call_operand.vmem [shape: f32[16,256], index: 0, kind: input, shape index: {}]   ;;  %s1253_s1 = inlined_call_operand.vmem [shape: bf16[256,256], index: 1, kind: input, shape index: {}]   ;;  %s1254_s2 = inlined_call_operand.vmem [shape: f32[1,256], index: 2, kind: input, shape index: {}]   ;;  %s1255_s3 = inlined_call_operand.vmem [shape: f32[1,256], index: 3, kind: input, shape index: {}]   ;;  %s1256_s4 = inlined_call_operand.vmem [shape: f32[16,256], index: 4, kind: output, shape index: {}]  }
   0x1   :  { %s1033_s17 = smov 0   ;;  %s1035_s18 = smov 0  }
   0x2   :  { %s1037_s19 = smov 0   ;;  %s1039_s20 = smov 0  }
   0x3   :  { %s1041_s21 = smov 0   ;;  %s1043_s22 = smov 0  }
   0x4   :  { %s1045_s23 = smov 0   ;;  %s1047_s24 = smov 0  }
   0x5   :  { %s1049_s25 = smov 0  }
   0x6 LB: > { %1260 = sst [smem:[#allocation6_spill]] %s979_s20  ;;  %s752_s26 = sadd.s32 4294967295, %s999_s25   ;;  %s999_s25 = sphi %s1049_s25, %s14_s25   ;;  %s995_s24 = sphi %s1047_s24, %s1278_s24   ;;  %s991_s23 = sphi %s1045_s23, %s1277_s23   ;;  %s987_s22 = sphi %s1043_s22, %s1276_s22   ;;  %s983_s21 = sphi %s1041_s21, %s1275_s21   ;;  %s979_s20 = sphi %s1039_s20, %s1268_s20   ;;  %s975_s19 = sphi %s1037_s19, %s1267_s19   ;;  %s971_s18 = sphi %s1035_s18, %s1274_s18   ;;  %s967_s17 = sphi %s1033_s17, %s1273_s17   ;;  %s963_s16 = sphi %s1031_s16, %s1272_s16   ;;  %s959_s15 = sphi %s1029_s15, %s1271_s15  }
   0x7   : > { %s23_s27 = sadd.s32 1, %s991_s23  ;;  %s26_s28 = sadd.s32 1, %s995_s24 }
   0x8   : > { %p24_p0 = scmp.ge.s32.totalorder %s23_s27, 2  ;;  %s33_s29 = sadd.s32 1, %s979_s20 }
   0x9   : > { %p40_p1 = scmp.ne.s32.totalorder %s979_s20, %s975_s19  ;;  %p41_p2 = scmp.eq.s32.totalorder %s999_s25, 0 }
   0xa   : > { %s1280_s27 = smov (%p24_p0, %s23_s27), 0  ;;  %s1282_s28 = smov (!%p24_p0, %s26_s28), %s995_s24 }
   0xb   : > { %1261 = sst [smem:[#allocation7_spill]] %s1280_s27  ;;  %s30_s30 = ssub.s32 %s991_s23, %s1280_s27 }
   0xc   : > { %p28_p3 = scmp.ge.s32.totalorder %s1282_s28, 2  ;;  %p31_p4 = scmp.eq.s32.totalorder %s30_s30, 0 }
   0xd   : > { %p1096_p5 = por %p41_p2, %p40_p1  ;;  %s61_s6 = sadd.s32 1, %s971_s18 }
   0xe   : > { %s1284_s28 = smov (%p28_p3, %s1282_s28), 0  ;;  %p68_p6 = scmp.ne.s32.totalorder %s971_s18, %s967_s17 }
   0xf   : > { %1263 = sst [smem:[#allocation8_spill]] %s1284_s28  ;;  %s57_s8 = ssub.s32 %s995_s24, %s1284_s28 }
  0x10   : > { %s1104_s7 = scalar_select %p31_p4, %s979_s20, %s33_s29  }
  0x11   : > { %s58_s9 = sor.u32 %s57_s8, %s30_s30  ;;  %p137_p7 = scmp.eq.s32.totalorder %s57_s8, 0 }
  0x12   : > { %1264 = sst [smem:[#allocation9_spill]] %s1104_s7  ;;  %p59_p8 = scmp.eq.s32.totalorder %s58_s9, 0 }
  0x13   : > { %p1110_p9 = por %p68_p6, %p41_p2  ;;  %s139_s11 = sadd.s32 1, %s963_s16 }
  0x14   : > { %p149_p10 = scmp.ne.s32.totalorder %s963_s16, %s959_s15  ;;  %p150_p11 = scmp.eq.s32.totalorder %s752_s26, 3 }
  0x15   : > { %s1118_s12 = scalar_select %p59_p8, %s971_s18, %s61_s6  }
  0x16   : > { %s1121_s13 = scalar_select %p137_p7, %s963_s16, %s139_s11  }
  0x17   : > { %p1123_p12 = por %p150_p11, %p149_p10  ;;  %p755_p13 = scmp.ge.s32.totalorder %s999_s25, 4 }
  0x19   : > { %172 = sbr.rel (%p755_p13) target bundleno = 55 (0x37), region = 16 }
  0x20   : > { %175 = sbr.rel (!%p1096_p5) target bundleno = 39 (0x27), region = 20  ;;  %s177_s29 = sand.u32 (%p1096_p5), 1, %s979_s20  }
  0x21   : > { %s757_s30 = sshll.u32 (%p1096_p5), %s991_s23, 3  ;;  %s756_s8 = sshll.u32 (%p1096_p5), %s177_s29, 4 }
  0x22   : > { %s181_s11 = scalar_lea.vmem (%p1096_p5), %s1252_s0, %s757_s30  ;;  %s179_s26 = scalar_lea.vmem (%p1096_p5), [#allocation3], %s756_s8 }
  0x23   : > { %v211_v0 = vld [vmem:[%s181_s11] sm:$0xff] (%p1096_p5)  ;;  %v213_v1 = vld [vmem:[%s181_s11 + $0x10] sm:$0xff] (%p1096_p5) }
  0x24   : > { %212 = vst [vmem:[%s179_s26] sm:$0xff] (%p1096_p5), %v211_v0  ;;  %214 = vst [vmem:[%s179_s26 + $0x8] sm:$0xff] (%p1096_p5), %v213_v1 }
  0x27 PF: > { %220 = sbr.rel (!%p1110_p9) target bundleno = 55 (0x37), region = 58  ;;  %s222_s5 = sand.u32 (%p1110_p9), 1, %s971_s18  }
  0x28   : > { %s780_s28 = sshll.u32 (%p1110_p9), %s991_s23, 5  ;;  %s758_s27 = sshll.u32 (%p1110_p9), %s222_s5, 6 }
  0x29   : > { %s227_s29 = sadd.s32 (%p1110_p9), %s995_s24, %s780_s28  ;;  %s224_s10 = scalar_lea.vmem (%p1110_p9), [#allocation4], %s758_s27 }
  0x2a   : > { %s761_s7 = sshll.u32 (%p1110_p9), %s227_s29, 2 }
  0x2b   : > { %s1143_s30 = scalar_lea.vmem (%p1110_p9), %s1253_s1, %s761_s7 }
  0x2c   : > { %v245_v2 = vld [vmem:[%s1143_s30] sm:$0xf] (%p1110_p9)  ;;  %v247_v3 = vld [vmem:[%s1143_s30 + $0x8] sm:$0xf] (%p1110_p9)  ;;  %v249_v4 = vld [vmem:[%s1143_s30 + $0x10] sm:$0xf] (%p1110_p9) }
  0x2d   : > { %246 = vst [vmem:[%s224_s10] sm:$0xf] (%p1110_p9), %v245_v2  ;;  %248 = vst [vmem:[%s224_s10 + $0x4] sm:$0xf] (%p1110_p9), %v247_v3  ;;  %v251_v5 = vld [vmem:[%s1143_s30 + $0x18] sm:$0xf] (%p1110_p9) }
  0x2e   : > { %250 = vst [vmem:[%s224_s10 + $0x8] sm:$0xf] %v249_v4  ;;  %v253_v6 = vld [vmem:[%s1143_s30 + $0x20] sm:$0xf]  ;;  %v255_v7 = vld [vmem:[%s1143_s30 + $0x28] sm:$0xf] }
  0x2f   : > { %252 = vst [vmem:[%s224_s10 + $0xc] sm:$0xf] %v251_v5  ;;  %254 = vst [vmem:[%s224_s10 + $0x10] sm:$0xf] %v253_v6  ;;  %v257_v8 = vld [vmem:[%s1143_s30 + $0x30] sm:$0xf] }
  0x30   : > { %256 = vst [vmem:[%s224_s10 + $0x14] sm:$0xf] %v255_v7  ;;  %v259_v9 = vld [vmem:[%s1143_s30 + $0x38] sm:$0xf]  ;;  %v261_v10 = vld [vmem:[%s1143_s30 + $0x40] sm:$0xf] }
  0x31   : > { %258 = vst [vmem:[%s224_s10 + $0x18] sm:$0xf] %v257_v8  ;;  %260 = vst [vmem:[%s224_s10 + $0x1c] sm:$0xf] %v259_v9  ;;  %v263_v11 = vld [vmem:[%s1143_s30 + $0x48] sm:$0xf] }
  0x32   : > { %262 = vst [vmem:[%s224_s10 + $0x20] sm:$0xf] %v261_v10  ;;  %v265_v12 = vld [vmem:[%s1143_s30 + $0x50] sm:$0xf]  ;;  %v267_v13 = vld [vmem:[%s1143_s30 + $0x58] sm:$0xf] }
  0x33   : > { %264 = vst [vmem:[%s224_s10 + $0x24] sm:$0xf] %v263_v11  ;;  %266 = vst [vmem:[%s224_s10 + $0x28] sm:$0xf] %v265_v12  ;;  %v269_v14 = vld [vmem:[%s1143_s30 + $0x60] sm:$0xf] }
  0x34   : > { %268 = vst [vmem:[%s224_s10 + $0x2c] sm:$0xf] %v267_v13  ;;  %v271_v15 = vld [vmem:[%s1143_s30 + $0x68] sm:$0xf]  ;;  %v273_v16 = vld [vmem:[%s1143_s30 + $0x70] sm:$0xf] }
  0x35   : > { %270 = vst [vmem:[%s224_s10 + $0x30] sm:$0xf] %v269_v14  ;;  %272 = vst [vmem:[%s224_s10 + $0x34] sm:$0xf] %v271_v15  ;;  %v275_v17 = vld [vmem:[%s1143_s30 + $0x78] sm:$0xf] }
  0x36   : > { %274 = vst [vmem:[%s224_s10 + $0x38] sm:$0xf] %v273_v16  ;;  %276 = vst [vmem:[%s224_s10 + $0x3c] sm:$0xf] %v275_v17 }
  0x37 PF: > { %p762_p0 = scmp.ge.s32.totalorder %s999_s25, 1  ;;  %p342_p1 = scmp.lt.s32.totalorder %s999_s25, 5 }
  0x39   : > { %p343_p2 = pnand %p762_p0, %p342_p1 }
  0x3a   : > { %s349_s20 = sand.u32 (!%p343_p2), 1, %s975_s19   ;;  %s356_s27 = sand.u32 (!%p343_p2), 1, %s967_s17  }
  0x3b   : > { %346 = sbr.rel (%p343_p2) target bundleno = 397 (0x18d), region = 107  ;;  %s1165_s28 = sshll.u32 (!%p343_p2), %s349_s20, 4 }
  0x3c   : > { %s764_s7 = sshll.u32 (!%p343_p2), %s356_s27, 6  ;;  %s387_s8 = sand.u32 (!%p343_p2), 1, %s959_s15  }
  0x3d   : > { %p391_p3 = scmp.lt.s32.totalorder (!%p343_p2), %s987_s22, 1  ;;  %s765_s9 = sshll.u32 (!%p343_p2), %s387_s8, 4 }
  0x3e   : > { %s351_s17 = scalar_lea.vmem (!%p343_p2), [#allocation3], %s1165_s28  ;;  %s1181_s10 = scalar_lea.vmem (!%p343_p2), [#allocation4], %s764_s7 }
  0x3f   : > { %s1183_s20 = scalar_lea.vmem (!%p343_p2), [#allocation5], %s765_s9  ;;  %p766_p4 = scmp.ne.s32.totalorder (!%p343_p2), %s983_s21, 0 }
  0x42   : > { %s1170_s11 = scalar_select %p391_p3, %s987_s22, 1 }
  0x43   : > { %401 = sbr.rel (%p766_p4) target bundleno = 74 (0x4a), region = 119  ;;  %v1001_v18 = vmov (!%p766_p4), 0.0  }
  0x44   : > { %s393_s29 = scalar_lea.vmem %s1254_s2, %s1170_s11  ;;  %s396_s19 = scalar_lea.vmem %s1255_s3, %s1170_s11  ;;  %402 = vst [vmem:[#allocation2] sm:$0xff] (!%p766_p4), %v1001_v18  ;;  %403 = vst [vmem:[#allocation2 + $0x8] sm:$0xff] (!%p766_p4), %v1001_v18 }
  0x4a PF: > { %v901_v19 = vld [vmem:[%s1181_s10] sm:$0xff]   ;;  %v1002_v20 = vmov 0.0   ;;  %v902_v21 = vld [vmem:[%s1181_s10 + $0x8] sm:$0xff]   ;;  %vm1003_vm0 = vmmov 0   ;;  %v903_v22 = vld [vmem:[%s1181_s10 + $0x10] sm:$0xff]   ;;  %p775_p5 = scmp.ne.s32.totalorder %s983_s21, 1 }
  0x4b   : > { %790 = vmatprep.subr.bf16.mxu0 %v1002_v20  ;;  %806 = vmatprep.mubr.msk.bf16.mxu0 %vm1003_vm0, %v1002_v20  ;;  %v904_v23 = vld [vmem:[%s1181_s10 + $0x18] sm:$0xff]   ;;  %v905_v24 = vld [vmem:[%s1181_s10 + $0x20] sm:$0xff]   ;;  %v906_v25 = vld [vmem:[%s1181_s10 + $0x28] sm:$0xff]   ;;  %v571_v11 = vlaneseq (!%p775_p5) }
  0x4c   : > { %791 = vmatpush3.bf16.msra.mxu0 %v901_v19  ;;  %v907_v26 = vld [vmem:[%s1181_s10 + $0x30] sm:$0xff]   ;;  %v908_v27 = vld [vmem:[%s1181_s10 + $0x38] sm:$0xff]  }
  0x4d   : > { %792 = vmatprep.subr.bf16.mxu0 %v1002_v20  ;;  %v406_v28 = vld [vmem:[%s351_s17] sm:$0xff]  ;;  %v407_v29 = vld [vmem:[%s351_s17 + $0x8] sm:$0xff]  ;;  %v572_v12 = vshrl.u32 (!%p775_p5), %v571_v11, 7 }
  0x4e   : > { %v408_v30 = vpack.c.bf16 %v407_v29, %v406_v28  ;;  %v404_v31 = vld [vmem:[#allocation2] sm:$0xff]  ;;  %v405_v33 = vld [vmem:[#allocation2 + $0x8] sm:$0xff] }
  0x4f   : > { %v557_v13 = vld [vmem:[%s393_s29] sm:$0x1] (!%p775_p5)  ;;  %v573_v14 = vsub.s32 (!%p775_p5), 0, %v572_v12 }
  0x50   : > { %793 = vmatpush3.bf16.msra.mxu0 %v902_v21  ;;  %v564_v18 = vld [vmem:[%s396_s19] sm:$0x1] (!%p775_p5) }
  0x51   : > { %794 = vmatprep.subr.bf16.mxu0 %v1002_v20 }
  0x54   : > { %795 = vmatpush3.bf16.msra.mxu0 %v903_v22 }
  0x55   : > { %796 = vmatprep.subr.bf16.mxu0 %v1002_v20 }
  0x58   : > { %797 = vmatpush3.bf16.msra.mxu0 %v904_v23 }
  0x59   : > { %798 = vmatprep.subr.bf16.mxu0 %v1002_v20 }
  0x5c   : > { %799 = vmatpush3.bf16.msra.mxu0 %v905_v24 }
  0x5d   : > { %800 = vmatprep.subr.bf16.mxu0 %v1002_v20 }
  0x60   : > { %801 = vmatpush3.bf16.msra.mxu0 %v906_v25 }
  0x61   : > { %802 = vmatprep.subr.bf16.mxu0 %v1002_v20 }
  0x64   : > { %803 = vmatpush3.bf16.msra.mxu0 %v907_v26 }
  0x65   : > { %804 = vmatprep.subr.bf16.mxu0 %v1002_v20 }
  0x68   : > { %805 = vmatpush3.bf16.msra.mxu0 %v908_v27 }
  0x6b   : > { %807 = vmatmul.mubr.bf16.vlgmr.msra.gmra.mrb[0].mxu0 %v408_v30 }
 0x13d   : > { %521 = sbr.rel (%p775_p5) target bundleno = 389 (0x185), region = 123 }
 0x13e   : > { %v507_v32 = vpop.f32.mrb[0].mxu0 }
 0x13f   : > { %v514_v34 = vadd.f32 %v507_v32, %v404_v31  ;;  %v808_v35 = vpop.f32.mrb[1].mxu0 }
 0x140   : > { %v510_v36 = vpop.f32.mrb[2].mxu0 }
 0x141   : > { %516 = vst [vmem:[#allocation2] sm:$0xff] %v514_v34  ;;  %v515_v37 = vadd.f32 %v510_v36, %v405_v33  ;;  %v809_v38 = vpop.f32.mrb[3].mxu0 }
 0x143   : > { %517 = vst [vmem:[#allocation2 + $0x8] sm:$0xff] %v515_v37 }
 0x148   : > { %v522_v39 = vld [vmem:[#allocation2] sm:$0xff] }
 0x149   : > { %v524_v40 = vrot.slane %v522_v39, 4 }
 0x14a   : > { %v523_v41 = vld [vmem:[#allocation2 + $0x8] sm:$0xff] }
 0x14b   : > { %v530_v42 = vrot.slane %v523_v41, 4  ;;  %v525_v43 = vadd.f32 %v524_v40, %v522_v39 }
 0x14d   : > { %v531_v44 = vadd.f32 %v530_v42, %v523_v41  ;;  %v526_v45 = vrot.slane %v525_v43, 2 }
 0x14f   : > { %v532_v46 = vrot.slane %v531_v44, 2  ;;  %v527_v47 = vadd.f32 %v526_v45, %v525_v43 }
 0x151   : > { %v533_v48 = vadd.f32 %v532_v46, %v531_v44  ;;  %v528_v49 = vrot.slane %v527_v47, 1 }
 0x153   : > { %v534_v50 = vrot.slane %v533_v48, 1  ;;  %v529_v51 = vadd.f32 %v528_v49, %v527_v47 }
 0x155   : > { %v535_v52 = vadd.f32 %v534_v50, %v533_v48  ;;  %v537_v53 = vmul.f32 0.125, %v529_v51 }
 0x157   : > { %v538_v54 = vmul.f32 0.125, %v535_v52  ;;  %v539_v55 = vsub.f32 %v522_v39, %v537_v53 }
 0x159   : > { %v540_v56 = vsub.f32 %v523_v41, %v538_v54  ;;  %v541_v57 = vmul.f32 %v539_v55, %v539_v55 }
 0x15b   : > { %v542_v58 = vmul.f32 %v540_v56, %v540_v56  ;;  %v543_v59 = vrot.slane %v541_v57, 4 }
 0x15d   : > { %v549_v60 = vrot.slane %v542_v58, 4  ;;  %v544_v61 = vadd.f32 %v543_v59, %v541_v57 }
 0x15f   : > { %v550_v62 = vadd.f32 %v549_v60, %v542_v58  ;;  %v545_v63 = vrot.slane %v544_v61, 2 }
 0x161   : > { %v551_v0 = vrot.slane %v550_v62, 2  ;;  %v546_v1 = vadd.f32 %v545_v63, %v544_v61 }
 0x163   : > { %v552_v2 = vadd.f32 %v551_v0, %v550_v62  ;;  %v547_v3 = vrot.slane %v546_v1, 1 }
 0x165   : > { %v553_v4 = vrot.slane %v552_v2, 1  ;;  %v548_v5 = vadd.f32 %v547_v3, %v546_v1 }
 0x167   : > { %v554_v6 = vadd.f32 %v553_v4, %v552_v2  ;;  %v555_v7 = vmul.f32 0.125, %v548_v5 }
 0x169   : > { %v556_v8 = vmul.f32 0.125, %v554_v6  ;;  %v558_v9 = vadd.f32 1e-05, %v555_v7 }
 0x16b   : > { %v559_v10 = vadd.f32 1e-05, %v556_v8  ;;  %909 = vrsqrt.f32 %v558_v9 }
 0x16d   : > { %911 = vrsqrt.f32 %v559_v10 }
 0x175   : > { %v910_v15 = vpop.eup %909 }
 0x176   : > { %v562_v17 = vmul.f32 %v910_v15, %v557_v13 }
 0x177   : > { %v912_v16 = vpop.eup %911 }
 0x178   : > { %v563_v19 = vmul.f32 %v912_v16, %v557_v13  ;;  %v565_v20 = vmul.f32 %v562_v17, %v537_v53  ;;  %v574_v21 = vrot.slane %v562_v17, %v573_v14 }
 0x17a   : > { %v566_v22 = vmul.f32 %v563_v19, %v538_v54  ;;  %v578_v23 = vrot.slane %v563_v19, %v573_v14  ;;  %v567_v24 = vsub.f32 %v564_v18, %v565_v20  ;;  %v581_v25 = vmul.f32 %v574_v21, %v522_v39 }
 0x17c   : > { %v568_v26 = vsub.f32 %v564_v18, %v566_v22  ;;  %v582_v27 = vmul.f32 %v578_v23, %v523_v41  ;;  %v588_v28 = vrot.slane %v567_v24, %v573_v14 }
 0x17e   : > { %v592_v29 = vrot.slane %v568_v26, %v573_v14  ;;  %v595_v30 = vadd.f32 %v588_v28, %v581_v25 }
 0x180   : > { %v596_v31 = vadd.f32 %v592_v29, %v582_v27  ;;  %v597_v32 = vmax.f32 %v595_v30, 0.0 }
 0x182   : > { %v598_v33 = vmax.f32 %v596_v31, 0.0  ;;  %599 = vst [vmem:[%s1183_s20] sm:$0xff] %v597_v32 }
 0x184   : > { %600 = vst [vmem:[%s1183_s20 + $0x8] sm:$0xff] %v598_v33 }
 0x185 PF: > { %607 = sbr.rel (!%p1123_p12) target bundleno = 397 (0x18d), region = 127  ;;  %s777_s7 = sshll.u32 (%p1123_p12), %s987_s22, 3 }
 0x186   : > { %s609_s11 = scalar_lea.vmem (%p1123_p12), %s1256_s4, %s777_s7 }
 0x189   : > { %v639_v34 = vld [vmem:[%s1183_s20] sm:$0xff] (%p1123_p12) }
 0x18a   : > { %640 = vst [vmem:[%s609_s11] sm:$0xff] (%p1123_p12), %v639_v34 }
 0x18b   : > { %v641_v35 = vld [vmem:[%s1183_s20 + $0x8] sm:$0xff] (%p1123_p12) }
 0x18c   : > { %642 = vst [vmem:[%s609_s11 + $0x10] sm:$0xff] %v641_v35 }
 0x18d PF: > { %s14_s25 = sadd.s32 1, %s999_s25   ;;  %s1267_s19 = sld [smem:[#allocation6_spill]] }
 0x18e   : > { %p11_p6 = scmp.ge.s32.totalorder %s14_s25, 6   ;;  %s1268_s20 = sld [smem:[#allocation9_spill]] }
 0x18f   : > { %s1269_s14 = sld [smem:[#allocation7_spill]]  ;;  %s1270_s26 = sld [smem:[#allocation8_spill]] }
 0x190   : > { %s1271_s15 = smov %s963_s16  ;;  %s1272_s16 = smov %s1121_s13 }
 0x191   : > { %s1273_s17 = smov %s971_s18  ;;  %s1274_s18 = smov %s1118_s12 }
 0x192   : > { %s1275_s21 = smov %s991_s23  ;;  %s1276_s22 = smov %s995_s24 }
 0x193   :  { %13 = sbr.rel (!%p11_p6) target bundleno = 6 (0x6), region = 210 }
 0x195   : > { %s1277_s23 = smov %s1269_s14  ;;  %s1278_s24 = smov %s1270_s26 }

// kernel: barlow_twins_forward.10
= control target key start
LH: loop header
LB: loop body
LE: loop exit
PB: predicated region body
PF: predicated region fallthrough
CT: control target
= control target key end

     0   :  { %s370_s6 = smov 0   ;;  %s372_s7 = smov 0   ;;  %s434_s0 = inlined_call_operand.vmem [shape: f32[16,256], index: 0, kind: input, shape index: {}]   ;;  %s435_s1 = inlined_call_operand.vmem [shape: f32[16,256], index: 1, kind: output, shape index: {}]  }
   0x1   :  { %s374_s8 = smov 0  }
   0x2 LB: > { %s295_s9 = sadd.s32 4294967295, %s358_s8   ;;  %s387_s10 = sadd.s32 1, %s358_s8   ;;  %s358_s8 = sphi %s374_s8, %s439_s8   ;;  %s354_s7 = sphi %s372_s7, %s438_s7   ;;  %s350_s6 = sphi %s370_s6, %s437_s6  }
   0x3   : > { %s15_s11 = ssub.s32 %s358_s8, %s387_s10  ;;  %s18_s12 = sadd.s32 1, %s354_s7 }
   0x4   : > { %p16_p0 = scmp.eq.s32.totalorder %s15_s11, 0  ;;  %p25_p1 = scmp.ne.s32.totalorder %s354_s7, %s350_s6 }
   0x5   : > { %p26_p2 = scmp.eq.s32.totalorder %s358_s8, 0  ;;  %p55_p3 = scmp.eq.s32.totalorder %s295_s9, 1 }
   0x6   : > { %s398_s13 = scalar_select %p16_p0, %s354_s7, %s18_s12  }
   0x7   : > { %p27_p4 = por %p26_p2, %p25_p1  ;;  %p400_p5 = por %p55_p3, %p25_p1 }
   0x8   : > { %p298_p6 = scmp.ge.s32.totalorder %s358_s8, 2 }
   0xa   : > { %77 = sbr.rel (%p298_p6) target bundleno = 24 (0x18), region = 16 }
  0x11   : > { %80 = sbr.rel (!%p27_p4) target bundleno = 24 (0x18), region = 20  ;;  %s82_s15 = sand.u32 (%p27_p4), 1, %s354_s7  }
  0x12   : > { %s300_s16 = sshll.u32 (%p27_p4), %s358_s8, 3  ;;  %s299_s17 = sshll.u32 (%p27_p4), %s82_s15, 4 }
  0x13   : > { %s86_s20 = scalar_lea.vmem (%p27_p4), %s434_s0, %s300_s16  ;;  %s84_s21 = scalar_lea.vmem (%p27_p4), [#allocation2], %s299_s17 }
  0x14   : > { %v116_v0 = vld [vmem:[%s86_s20] sm:$0xff] (%p27_p4)  ;;  %v118_v1 = vld [vmem:[%s86_s20 + $0x10] sm:$0xff] (%p27_p4) }
  0x15   : > { %117 = vst [vmem:[%s84_s21] sm:$0xff] (%p27_p4), %v116_v0  ;;  %119 = vst [vmem:[%s84_s21 + $0x8] sm:$0xff] (%p27_p4), %v118_v1 }
  0x18 PF: > { %p301_p7 = scmp.ge.s32.totalorder %s358_s8, 1  ;;  %p124_p8 = scmp.lt.s32.totalorder %s358_s8, 3 }
  0x1a   : > { %p125_p9 = pnand %p301_p7, %p124_p8 }
  0x1b   : > { %s131_s22 = sand.u32 (!%p125_p9), 1, %s350_s6  }
  0x1c   : > { %128 = sbr.rel (%p125_p9) target bundleno = 90 (0x5a), region = 58  ;;  %s413_s23 = sshll.u32 (!%p125_p9), %s131_s22, 4 }
  0x1d   : > { %s133_s24 = scalar_lea.vmem (!%p125_p9), [#allocation2], %s413_s23  ;;  %s148_s25 = scalar_lea.vmem (!%p125_p9), [#allocation3], %s413_s23 }
  0x1e   : > { %v149_v2 = vld [vmem:[%s133_s24] sm:$0xff] (!%p125_p9)  ;;  %v150_v3 = vld [vmem:[%s133_s24 + $0x8] sm:$0xff] (!%p125_p9) }
  0x1f   : > { %v151_v4 = vrot.slane (!%p125_p9), %v149_v2, 4  ;;  %v157_v5 = vrot.slane (!%p125_p9), %v150_v3, 4 }
  0x21   : > { %v152_v6 = vadd.f32 (!%p125_p9), %v151_v4, %v149_v2  ;;  %v158_v7 = vadd.f32 (!%p125_p9), %v157_v5, %v150_v3 }
  0x23   : > { %v153_v8 = vrot.slane %v152_v6, 2  ;;  %v159_v9 = vrot.slane %v158_v7, 2  ;;  %s305_s26 = sshll.u32 (%p400_p5), %s295_s9, 3 }
  0x24   : > { %s202_s29 = scalar_lea.vmem (%p400_p5), %s435_s1, %s305_s26 }
  0x25   : > { %v154_v10 = vadd.f32 %v153_v8, %v152_v6  ;;  %v160_v11 = vadd.f32 %v159_v9, %v158_v7 }
  0x27   : > { %v155_v12 = vrot.slane %v154_v10, 1  ;;  %v161_v13 = vrot.slane %v160_v11, 1 }
  0x29   : > { %v156_v14 = vadd.f32 %v155_v12, %v154_v10  ;;  %v162_v15 = vadd.f32 %v161_v13, %v160_v11 }
  0x2b   : > { %v164_v16 = vmul.f32 0.125, %v156_v14  ;;  %v165_v17 = vmul.f32 0.125, %v162_v15 }
  0x2d   : > { %v166_v18 = vsub.f32 %v149_v2, %v164_v16  ;;  %v167_v19 = vsub.f32 %v150_v3, %v165_v17 }
  0x2f   : > { %v168_v20 = vmul.f32 %v166_v18, %v166_v18  ;;  %v169_v21 = vmul.f32 %v167_v19, %v167_v19 }
  0x31   : > { %v170_v22 = vrot.slane %v168_v20, 4  ;;  %v176_v23 = vrot.slane %v169_v21, 4 }
  0x33   : > { %v171_v24 = vadd.f32 %v170_v22, %v168_v20  ;;  %v177_v25 = vadd.f32 %v176_v23, %v169_v21 }
  0x35   : > { %v172_v26 = vrot.slane %v171_v24, 2  ;;  %v178_v27 = vrot.slane %v177_v25, 2 }
  0x37   : > { %v173_v28 = vadd.f32 %v172_v26, %v171_v24  ;;  %v179_v29 = vadd.f32 %v178_v27, %v177_v25 }
  0x39   : > { %v174_v30 = vrot.slane %v173_v28, 1  ;;  %v180_v31 = vrot.slane %v179_v29, 1 }
  0x3b   : > { %v175_v32 = vadd.f32 %v174_v30, %v173_v28  ;;  %v181_v33 = vadd.f32 %v180_v31, %v179_v29 }
  0x3d   : > { %v182_v34 = vmul.f32 0.125, %v175_v32  ;;  %v183_v35 = vmul.f32 0.125, %v181_v33 }
  0x3f   : > { %v184_v36 = vadd.f32 1e-05, %v182_v34  ;;  %v185_v37 = vadd.f32 1e-05, %v183_v35 }
  0x41   : > { %332 = vrsqrt.f32 %v184_v36 }
  0x42   : > { %334 = vrsqrt.f32 %v185_v37 }
  0x4b   : > { %v333_v38 = vpop.eup %332  ;;  %200 = sbr.rel (!%p400_p5) target bundleno = 90 (0x5a), region = 66 }
  0x4c   : > { %v335_v39 = vpop.eup %334  ;;  %v188_v40 = vmul.f32 0.35355338, %v333_v38 }
  0x4d   : > { %v189_v41 = vmul.f32 0.35355338, %v335_v39 }
  0x4e   : > { %v190_v42 = vmul.f32 %v188_v40, %v166_v18 }
  0x4f   : > { %v191_v43 = vmul.f32 %v189_v41, %v167_v19 }
  0x50   : > { %192 = vst [vmem:[%s148_s25] sm:$0xff] %v190_v42 }
  0x51   : > { %193 = vst [vmem:[%s148_s25 + $0x8] sm:$0xff] %v191_v43 }
  0x57   : > { %v232_v44 = vld [vmem:[%s148_s25] sm:$0xff] }
  0x58   : > { %v234_v45 = vld [vmem:[%s148_s25 + $0x8] sm:$0xff]  ;;  %233 = vst [vmem:[%s202_s29] sm:$0xff] %v232_v44 }
  0x59   : > { %235 = vst [vmem:[%s202_s29 + $0x10] sm:$0xff] %v234_v45 }
  0x5a PF: > { %p8_p10 = scmp.ge.s32.totalorder %s387_s10, 4   ;;  %s437_s6 = smov %s354_s7 }
  0x5b   : > { %s438_s7 = smov %s398_s13  ;;  %s439_s8 = smov %s387_s10 }
  0x5c   :  { %10 = sbr.rel (!%p8_p10) target bundleno = 2 (0x2), region = 135 }

// kernel: barlow_twins_forward.9
= control target key start
LH: loop header
LB: loop body
LE: loop exit
PB: predicated region body
PF: predicated region fallthrough
CT: control target
= control target key end

     0   :  { %s840_s9 = smov 0   ;;  %s842_s10 = smov 0   ;;  %s1041_s0 = inlined_call_operand.vmem [shape: f32[16,256], index: 0, kind: input, shape index: {}]   ;;  %s1042_s1 = inlined_call_operand.vmem [shape: bf16[256,256], index: 1, kind: input, shape index: {}]   ;;  %s1043_s2 = inlined_call_operand.vmem [shape: f32[16,256], index: 2, kind: output, shape index: {}]  }
   0x1   :  { %s844_s11 = smov 0   ;;  %s846_s12 = smov 0  }
   0x2   :  { %s848_s13 = smov 0   ;;  %s850_s14 = smov 0  }
   0x3   :  { %s852_s15 = smov 0   ;;  %s854_s16 = smov 0  }
   0x4   :  { %s856_s17 = smov 0   ;;  %s858_s18 = smov 0  }
   0x5   :  { %s860_s19 = smov 0  }
   0x6 LB: > { %s577_s20 = sadd.s32 4294967295, %s820_s19   ;;  %s21_s21 = sadd.s32 1, %s812_s17  ;;  %s820_s19 = sphi %s860_s19, %s12_s19   ;;  %s816_s18 = sphi %s858_s18, %s1062_s18   ;;  %s812_s17 = sphi %s856_s17, %s1061_s17   ;;  %s808_s16 = sphi %s854_s16, %s1060_s16   ;;  %s804_s15 = sphi %s852_s15, %s1059_s15   ;;  %s800_s14 = sphi %s850_s14, %s1058_s14   ;;  %s796_s13 = sphi %s848_s13, %s1057_s13   ;;  %s792_s12 = sphi %s846_s12, %s1056_s12   ;;  %s788_s11 = sphi %s844_s11, %s1055_s11   ;;  %s784_s10 = sphi %s842_s10, %s1054_s10   ;;  %s780_s9 = sphi %s840_s9, %s1053_s9  }
   0x7   : > { %p22_p0 = scmp.ge.s32.totalorder %s21_s21, 2  ;;  %s24_s22 = sadd.s32 1, %s816_s18 }
   0x8   : > { %s31_s23 = sadd.s32 1, %s800_s14  ;;  %p38_p1 = scmp.ne.s32.totalorder %s800_s14, %s796_s13 }
   0x9   : > { %s1064_s21 = smov (%p22_p0, %s21_s21), 0  ;;  %s1066_s22 = smov (!%p22_p0, %s24_s22), %s816_s18 }
   0xa   : > { %1046 = sst [smem:[#allocation6_spill]] %s1064_s21  ;;  %s28_s24 = ssub.s32 %s812_s17, %s1064_s21 }
   0xb   : > { %p39_p2 = scmp.eq.s32.totalorder %s820_s19, 0  ;;  %p26_p3 = scmp.ge.s32.totalorder %s1066_s22, 2 }
   0xc   : > { %p29_p4 = scmp.eq.s32.totalorder %s28_s24, 0  ;;  %s59_s26 = sadd.s32 1, %s792_s12 }
   0xd   : > { %p907_p5 = por %p39_p2, %p38_p1  ;;  %s1068_s22 = smov (%p26_p3, %s1066_s22), 0 }
   0xe   : > { %1048 = sst [smem:[#allocation7_spill]] %s1068_s22  ;;  %s55_s28 = ssub.s32 %s816_s18, %s1068_s22 }
   0xf   : > { %s915_s27 = scalar_select %p29_p4, %s800_s14, %s31_s23  }
  0x10   : > { %p66_p6 = scmp.ne.s32.totalorder %s792_s12, %s788_s11  ;;  %s56_s29 = sor.u32 %s55_s28, %s28_s24 }
  0x11   : > { %p83_p7 = scmp.eq.s32.totalorder %s55_s28, 0  ;;  %p57_p8 = scmp.eq.s32.totalorder %s56_s29, 0 }
  0x12   : > { %p921_p9 = por %p66_p6, %p39_p2  ;;  %s85_s3 = sadd.s32 1, %s784_s10 }
  0x13   : > { %p95_p10 = scmp.ne.s32.totalorder %s784_s10, %s780_s9  ;;  %p96_p11 = scmp.eq.s32.totalorder %s577_s20, 3 }
  0x14   : > { %s929_s4 = scalar_select %p57_p8, %s792_s12, %s59_s26  }
  0x15   : > { %s932_s5 = scalar_select %p83_p7, %s784_s10, %s85_s3  }
  0x16   : > { %p934_p12 = por %p96_p11, %p95_p10  ;;  %p580_p13 = scmp.ge.s32.totalorder %s820_s19, 4 }
  0x18   : > { %118 = sbr.rel (%p580_p13) target bundleno = 54 (0x36), region = 16 }
  0x1f   : > { %121 = sbr.rel (!%p907_p5) target bundleno = 38 (0x26), region = 20  ;;  %s123_s7 = sand.u32 (%p907_p5), 1, %s800_s14  }
  0x20   : > { %s582_s8 = sshll.u32 (%p907_p5), %s812_s17, 3  ;;  %s581_s23 = sshll.u32 (%p907_p5), %s123_s7, 4 }
  0x21   : > { %s127_s28 = scalar_lea.vmem (%p907_p5), %s1041_s0, %s582_s8  ;;  %s125_s20 = scalar_lea.vmem (%p907_p5), [#allocation3], %s581_s23 }
  0x22   : > { %v157_v0 = vld [vmem:[%s127_s28] sm:$0xff] (%p907_p5)  ;;  %v159_v1 = vld [vmem:[%s127_s28 + $0x10] sm:$0xff] (%p907_p5) }
  0x23   : > { %158 = vst [vmem:[%s125_s20] sm:$0xff] (%p907_p5), %v157_v0  ;;  %160 = vst [vmem:[%s125_s20 + $0x8] sm:$0xff] (%p907_p5), %v159_v1 }
  0x26 PF: > { %166 = sbr.rel (!%p921_p9) target bundleno = 54 (0x36), region = 58  ;;  %s168_s25 = sand.u32 (%p921_p9), 1, %s792_s12  }
  0x27   : > { %s605_s29 = sshll.u32 (%p921_p9), %s812_s17, 5  ;;  %s583_s3 = sshll.u32 (%p921_p9), %s168_s25, 6 }
  0x28   : > { %s173_s7 = sadd.s32 (%p921_p9), %s816_s18, %s605_s29  ;;  %s170_s30 = scalar_lea.vmem (%p921_p9), [#allocation4], %s583_s3 }
  0x29   : > { %s586_s22 = sshll.u32 (%p921_p9), %s173_s7, 2 }
  0x2a   : > { %s954_s8 = scalar_lea.vmem (%p921_p9), %s1042_s1, %s586_s22 }
  0x2b   : > { %v191_v2 = vld [vmem:[%s954_s8] sm:$0xf] (%p921_p9)  ;;  %v193_v3 = vld [vmem:[%s954_s8 + $0x8] sm:$0xf] (%p921_p9)  ;;  %v195_v4 = vld [vmem:[%s954_s8 + $0x10] sm:$0xf] (%p921_p9) }
  0x2c   : > { %192 = vst [vmem:[%s170_s30] sm:$0xf] (%p921_p9), %v191_v2  ;;  %194 = vst [vmem:[%s170_s30 + $0x4] sm:$0xf] (%p921_p9), %v193_v3  ;;  %v197_v5 = vld [vmem:[%s954_s8 + $0x18] sm:$0xf] (%p921_p9) }
  0x2d   : > { %196 = vst [vmem:[%s170_s30 + $0x8] sm:$0xf] %v195_v4  ;;  %v199_v6 = vld [vmem:[%s954_s8 + $0x20] sm:$0xf]  ;;  %v201_v7 = vld [vmem:[%s954_s8 + $0x28] sm:$0xf] }
  0x2e   : > { %198 = vst [vmem:[%s170_s30 + $0xc] sm:$0xf] %v197_v5  ;;  %200 = vst [vmem:[%s170_s30 + $0x10] sm:$0xf] %v199_v6  ;;  %v203_v8 = vld [vmem:[%s954_s8 + $0x30] sm:$0xf] }
  0x2f   : > { %202 = vst [vmem:[%s170_s30 + $0x14] sm:$0xf] %v201_v7  ;;  %v205_v9 = vld [vmem:[%s954_s8 + $0x38] sm:$0xf]  ;;  %v207_v10 = vld [vmem:[%s954_s8 + $0x40] sm:$0xf] }
  0x30   : > { %204 = vst [vmem:[%s170_s30 + $0x18] sm:$0xf] %v203_v8  ;;  %206 = vst [vmem:[%s170_s30 + $0x1c] sm:$0xf] %v205_v9  ;;  %v209_v11 = vld [vmem:[%s954_s8 + $0x48] sm:$0xf] }
  0x31   : > { %208 = vst [vmem:[%s170_s30 + $0x20] sm:$0xf] %v207_v10  ;;  %v211_v12 = vld [vmem:[%s954_s8 + $0x50] sm:$0xf]  ;;  %v213_v13 = vld [vmem:[%s954_s8 + $0x58] sm:$0xf] }
  0x32   : > { %210 = vst [vmem:[%s170_s30 + $0x24] sm:$0xf] %v209_v11  ;;  %212 = vst [vmem:[%s170_s30 + $0x28] sm:$0xf] %v211_v12  ;;  %v215_v14 = vld [vmem:[%s954_s8 + $0x60] sm:$0xf] }
  0x33   : > { %214 = vst [vmem:[%s170_s30 + $0x2c] sm:$0xf] %v213_v13  ;;  %v217_v15 = vld [vmem:[%s954_s8 + $0x68] sm:$0xf]  ;;  %v219_v16 = vld [vmem:[%s954_s8 + $0x70] sm:$0xf] }
  0x34   : > { %216 = vst [vmem:[%s170_s30 + $0x30] sm:$0xf] %v215_v14  ;;  %218 = vst [vmem:[%s170_s30 + $0x34] sm:$0xf] %v217_v15  ;;  %v221_v17 = vld [vmem:[%s954_s8 + $0x78] sm:$0xf] }
  0x35   : > { %220 = vst [vmem:[%s170_s30 + $0x38] sm:$0xf] %v219_v16  ;;  %222 = vst [vmem:[%s170_s30 + $0x3c] sm:$0xf] %v221_v17 }
  0x36 PF: > { %p587_p0 = scmp.ge.s32.totalorder %s820_s19, 1  ;;  %p276_p1 = scmp.lt.s32.totalorder %s820_s19, 5 }
  0x38   : > { %p277_p2 = pnand %p587_p0, %p276_p1 }
  0x39   : > { %s283_s21 = sand.u32 (!%p277_p2), 1, %s796_s13   ;;  %s290_s22 = sand.u32 (!%p277_p2), 1, %s788_s11  }
  0x3a   : > { %280 = sbr.rel (%p277_p2) target bundleno = 338 (0x152), region = 99  ;;  %s976_s23 = sshll.u32 (!%p277_p2), %s283_s21, 4 }
  0x3b   : > { %s589_s26 = sshll.u32 (!%p277_p2), %s290_s22, 6  ;;  %s311_s28 = sand.u32 (!%p277_p2), 1, %s780_s9  }
  0x3c   : > { %s590_s20 = sshll.u32 (!%p277_p2), %s311_s28, 4  ;;  %s285_s25 = scalar_lea.vmem (!%p277_p2), [#allocation3], %s976_s23 }
  0x3d   : > { %s980_s29 = scalar_lea.vmem (!%p277_p2), [#allocation4], %s589_s26  ;;  %s982_s3 = scalar_lea.vmem (!%p277_p2), [#allocation5], %s590_s20 }
  0x3e   : > { %p591_p3 = scmp.ne.s32.totalorder (!%p277_p2), %s804_s15, 0 }
  0x41   : > { %319 = sbr.rel (%p591_p3) target bundleno = 72 (0x48), region = 111  ;;  %v822_v18 = vmov (!%p591_p3), 0.0  }
  0x42   : > { %320 = vst [vmem:[#allocation2] sm:$0xff] (!%p591_p3), %v822_v18  ;;  %321 = vst [vmem:[#allocation2 + $0x8] sm:$0xff] (!%p591_p3), %v822_v18 }
  0x48 PF: > { %v726_v19 = vld [vmem:[%s980_s29] sm:$0xff]   ;;  %v823_v20 = vmov 0.0   ;;  %v727_v21 = vld [vmem:[%s980_s29 + $0x8] sm:$0xff]   ;;  %vm824_vm0 = vmmov 0   ;;  %v728_v22 = vld [vmem:[%s980_s29 + $0x10] sm:$0xff]   ;;  %p600_p4 = scmp.ne.s32.totalorder %s804_s15, 1 }
  0x49   : > { %615 = vmatprep.subr.bf16.mxu0 %v823_v20  ;;  %631 = vmatprep.mubr.msk.bf16.mxu0 %vm824_vm0, %v823_v20  ;;  %v729_v23 = vld [vmem:[%s980_s29 + $0x18] sm:$0xff]   ;;  %v730_v24 = vld [vmem:[%s980_s29 + $0x20] sm:$0xff]   ;;  %v731_v25 = vld [vmem:[%s980_s29 + $0x28] sm:$0xff]  }
  0x4a   : > { %616 = vmatpush3.bf16.msra.mxu0 %v726_v19  ;;  %v732_v26 = vld [vmem:[%s980_s29 + $0x30] sm:$0xff]   ;;  %v733_v27 = vld [vmem:[%s980_s29 + $0x38] sm:$0xff]  }
  0x4b   : > { %617 = vmatprep.subr.bf16.mxu0 %v823_v20  ;;  %v324_v28 = vld [vmem:[%s285_s25] sm:$0xff]  ;;  %v325_v29 = vld [vmem:[%s285_s25 + $0x8] sm:$0xff] }
  0x4c   : > { %v326_v30 = vpack.c.bf16 %v325_v29, %v324_v28  ;;  %v322_v31 = vld [vmem:[#allocation2] sm:$0xff]  ;;  %v323_v33 = vld [vmem:[#allocation2 + $0x8] sm:$0xff] }
  0x4e   : > { %618 = vmatpush3.bf16.msra.mxu0 %v727_v21 }
  0x4f   : > { %619 = vmatprep.subr.bf16.mxu0 %v823_v20 }
  0x52   : > { %620 = vmatpush3.bf16.msra.mxu0 %v728_v22 }
  0x53   : > { %621 = vmatprep.subr.bf16.mxu0 %v823_v20 }
  0x56   : > { %622 = vmatpush3.bf16.msra.mxu0 %v729_v23 }
  0x57   : > { %623 = vmatprep.subr.bf16.mxu0 %v823_v20 }
  0x5a   : > { %624 = vmatpush3.bf16.msra.mxu0 %v730_v24 }
  0x5b   : > { %625 = vmatprep.subr.bf16.mxu0 %v823_v20 }
  0x5e   : > { %626 = vmatpush3.bf16.msra.mxu0 %v731_v25 }
  0x5f   : > { %627 = vmatprep.subr.bf16.mxu0 %v823_v20 }
  0x62   : > { %628 = vmatpush3.bf16.msra.mxu0 %v732_v26 }
  0x63   : > { %629 = vmatprep.subr.bf16.mxu0 %v823_v20 }
  0x66   : > { %630 = vmatpush3.bf16.msra.mxu0 %v733_v27 }
  0x69   : > { %632 = vmatmul.mubr.bf16.vlgmr.msra.gmra.mrb[0].mxu0 %v326_v30 }
 0x13b   : > { %439 = sbr.rel (%p600_p4) target bundleno = 330 (0x14a), region = 115 }
 0x13c   : > { %v425_v32 = vpop.f32.mrb[0].mxu0 }
 0x13d   : > { %v432_v34 = vadd.f32 %v425_v32, %v322_v31  ;;  %v633_v35 = vpop.f32.mrb[1].mxu0 }
 0x13e   : > { %v428_v36 = vpop.f32.mrb[2].mxu0 }
 0x13f   : > { %434 = vst [vmem:[#allocation2] sm:$0xff] %v432_v34  ;;  %v433_v37 = vadd.f32 %v428_v36, %v323_v33  ;;  %v634_v38 = vpop.f32.mrb[3].mxu0 }
 0x141   : > { %435 = vst [vmem:[#allocation2 + $0x8] sm:$0xff] %v433_v37 }
 0x146   : > { %v440_v39 = vld [vmem:[#allocation2] sm:$0xff] }
 0x147   : > { %442 = vst [vmem:[%s982_s3] sm:$0xff] %v440_v39 }
 0x148   : > { %v441_v40 = vld [vmem:[#allocation2 + $0x8] sm:$0xff] }
 0x149   : > { %443 = vst [vmem:[%s982_s3 + $0x8] sm:$0xff] %v441_v40 }
 0x14a PF: > { %450 = sbr.rel (!%p934_p12) target bundleno = 338 (0x152), region = 119  ;;  %s602_s9 = sshll.u32 (%p934_p12), %s808_s16, 3 }
 0x14b   : > { %s452_s15 = scalar_lea.vmem (%p934_p12), %s1043_s2, %s602_s9 }
 0x14e   : > { %v482_v41 = vld [vmem:[%s982_s3] sm:$0xff] (%p934_p12) }
 0x14f   : > { %483 = vst [vmem:[%s452_s15] sm:$0xff] (%p934_p12), %v482_v41 }
 0x150   : > { %v484_v42 = vld [vmem:[%s982_s3 + $0x8] sm:$0xff] (%p934_p12) }
 0x151   : > { %485 = vst [vmem:[%s452_s15 + $0x10] sm:$0xff] %v484_v42 }
 0x152 PF: > { %s12_s19 = sadd.s32 1, %s820_s19   ;;  %s1051_s6 = sld [smem:[#allocation6_spill]] }
 0x153   : > { %p9_p5 = scmp.ge.s32.totalorder %s12_s19, 6   ;;  %s1052_s7 = sld [smem:[#allocation7_spill]] }
 0x154   : > { %s1053_s9 = smov %s784_s10  ;;  %s1054_s10 = smov %s932_s5 }
 0x155   : > { %s1055_s11 = smov %s792_s12  ;;  %s1056_s12 = smov %s929_s4 }
 0x156   : > { %s1057_s13 = smov %s800_s14  ;;  %s1058_s14 = smov %s915_s27 }
 0x157   : > { %s1059_s15 = smov %s812_s17  ;;  %s1060_s16 = smov %s816_s18 }
 0x158   : > { %s1061_s17 = smov %s1051_s6  ;;  %11 = sbr.rel (!%p9_p5) target bundleno = 6 (0x6), region = 196 }
 0x159   : > { %s1062_s18 = smov %s1052_s7 }

// kernel: barlow_twins_forward.11
= control target key start
LH: loop header
LB: loop body
LE: loop exit
PB: predicated region body
PF: predicated region fallthrough
CT: control target
= control target key end

     0   :  { %7 = vsyncpa [#allocation3], 0  ;;  %s772_s9 = smov 0   ;;  %s774_s10 = smov 0   ;;  %s1038_s0 = inlined_call_operand.vmem [shape: f32[16,256], index: 0, kind: input, shape index: {}, may-alias: {0,1}]   ;;  %s1039_s1 = inlined_call_operand.vmem [shape: f32[16,256], index: 1, kind: input, shape index: {}, may-alias: {0,1}]   ;;  %s1040_s2 = inlined_call_operand.hbm [shape: f32[1,1], index: 2, kind: output, shape index: {}]  }
   0x1   :  { %s776_s11 = smov 0   ;;  %s778_s12 = smov 0  }
   0x2   :  { %s780_s13 = smov 0  }
   0x3 LB: > { %s577_s14 = sadd.s32 4294967295, %s753_s13   ;;  %s22_s15 = sadd.s32 1, %s745_s11  ;;  %s753_s13 = sphi %s780_s13, %s13_s13   ;;  %s749_s12 = sphi %s778_s12, %s1044_s12   ;;  %s745_s11 = sphi %s776_s11, %s1043_s11   ;;  %s741_s10 = sphi %s774_s10, %s1042_s10   ;;  %s737_s9 = sphi %s772_s9, %s1041_s9  }
   0x4   : > { %p23_p0 = scmp.ge.s32.totalorder %s22_s15, 2  ;;  %s25_s16 = sadd.s32 1, %s749_s12 }
   0x5   : > { %p580_p1 = scmp.ge.s32.totalorder %s753_s13, 1  ;;  %p129_p2 = scmp.lt.s32.totalorder %s753_s13, 5 }
   0x6   : > { %s1046_s15 = smov (%p23_p0, %s22_s15), 0  ;;  %s1048_s16 = smov (!%p23_p0, %s25_s16), %s749_s12 }
   0x7   : > { %p130_p3 = pnand %p580_p1, %p129_p2  ;;  %p27_p4 = scmp.ge.s32.totalorder %s1048_s16, 2 }
   0x8   : > { %p150_p5 = scmp.lt.s32.totalorder (!%p130_p3), %s741_s10, 1  ;;  %p154_p6 = scmp.lt.s32.totalorder (!%p130_p3), %s737_s9, 1  ;;  %vm213_vm0 = vcmask (!%p130_p3), 1043456   ;;  %vm188_vm1 = vcmask (!%p130_p3), 64512  }
   0x9   : > { %s1050_s16 = smov (%p27_p4, %s1048_s16), 0  ;;  %133 = sbr.rel (%p130_p3) target bundleno = 780 (0x30c), region = 28 }
   0xa   : > { %p160_p7 = scmp.eq.s32.totalorder (!%p130_p3), %s741_s10, 0  ;;  %p161_p8 = scmp.eq.s32.totalorder (!%p130_p3), %s737_s9, 0 }
   0xb   : > { %s755_s27 = smov (!%p130_p3), 0.0   ;;  %p592_p10 = scmp.ne.s32.totalorder (!%p130_p3), %s741_s10, %s737_s9 }
   0xc   : > { %p162_p9 = pnand (!%p130_p3), %p161_p8, %p160_p7 }
  0x10   : > { %s151_s17 = scalar_select %p150_p5, %s741_s10, 1 }
  0x11   : > { %s155_s18 = scalar_select %p154_p6, %s737_s9, 1 }
  0x12   : > { %s581_s19 = sshll.u32 %s151_s17, 3  ;;  %649 = sst [smem:[#allocation2]] (!%p162_p9), %s755_s27 }
  0x13   : > { %s153_s22 = scalar_lea.vmem %s1038_s0, %s581_s19  ;;  %s582_s23 = sshll.u32 %s155_s18, 3 }
  0x14   : > { %v168_v0 = vld [vmem:[%s153_s22] sm:$0xff]  ;;  %s540_s26 = scalar_lea.vmem %s1039_s1, %s582_s23  ;;  %s314_s28 = sld [smem:[#allocation2]] }
  0x15   : > { %v169_v1 = vpack.c.bf16 %v168_v0, %v168_v0  ;;  %v583_v2 = vld [vmem:[%s540_s26 + $0x10] sm:$0xff] }
  0x16   : > { %v171_v3 = vpack.c.bf16 %v583_v2, %v583_v2 }
  0x17   : > { %172 = vxpose.xlu0.c.b16.start.end [1/1] (short) %v169_v1, 128 }
  0x18   : > { %642 = vmatprep.subr.msk.bf16.mxu0 %vm213_vm0, %v171_v3  ;;  %v215_v4 = vsel %vm213_vm0, %v171_v3, 0  ;;  %643 = vmatprep.subr.msk.bf16.mxu1 %vm213_vm0, %v171_v3  ;;  %v363_v3 = vlaneseq (!%p592_p10) }
  0x19   : > { %623 = vmatpush3.bf16.msra.mxu0 %v215_v4  ;;  %641 = vmatpush3.bf16.msra.mxu1 %v215_v4 }
  0x7d   : > { %v180_v5 = vpop.trf.xlu0 }
  0x7e   : > { %624 = vmatprep.mubr.msk.bf16.mxu0 %vm188_vm1, %v180_v5 }
  0x81   : > { %v181_v6 = vpop.trf.xlu0 }
  0x82   : > { %625 = vmatmul.mubr.msk.bf16.vlgmr.msra.gmra.mrb[0].mxu0 %vm188_vm1, %v181_v6  ;;  %v943_v6 = vshrl.u32 (!%p592_p10), %v363_v3, 7 }
  0x85   : > { %v182_v7 = vpop.trf.xlu0 }
  0x86   : > { %628 = vmatprep.mubr.msk.bf16.mxu0 %vm188_vm1, %v182_v7 }
  0x89   : > { %v183_v8 = vpop.trf.xlu0 }
  0x8a   : > { %629 = vmatmul.mubr.msk.bf16.gmra.mrb[4].mxu0 %vm188_vm1, %v183_v8 }
  0x8d   : > { %v184_v9 = vpop.trf.xlu0 }
  0x8e   : > { %632 = vmatprep.mubr.msk.bf16.mxu1 %vm188_vm1, %v184_v9 }
  0x91   : > { %v185_v10 = vpop.trf.xlu0 }
  0x92   : > { %633 = vmatmul.mubr.msk.bf16.vlgmr.msra.gmra.mrb[0].mxu1 %vm188_vm1, %v185_v10 }
  0x95   : > { %v186_v11 = vpop.trf.xlu0 }
  0x96   : > { %636 = vmatprep.mubr.msk.bf16.mxu1 %vm188_vm1, %v186_v11 }
  0x99   : > { %v187_v12 = vpop.trf.xlu0 }
  0x9a   : > { %637 = vmatmul.mubr.msk.bf16.gmra.mrb[4].mxu1 %vm188_vm1, %v187_v12 }
 0x155   : > { %v825_v13 = vpop.f32.mrb[0].mxu0 }
 0x156   : > { %v827_v14 = vpop.f32.mrb[1].mxu0  ;;  %v843_v19 = vmul.f32 %v825_v13, %v825_v13  ;;  %v595_v7 = vadd.f32 (!%p592_p10), -1.0, %v825_v13 }
 0x157   : > { %v829_v15 = vpop.f32.mrb[2].mxu0  ;;  %v835_v17 = vmul.f32 %v827_v14, %v827_v14  ;;  %v593_v4 = vadd.f32 (!%p592_p10), -1.0, %v827_v14 }
 0x158   : > { %v831_v16 = vpop.f32.mrb[3].mxu0  ;;  %v849_v21 = vmul.f32 %v829_v15, %v829_v15  ;;  %v596_v8 = vadd.f32 (!%p592_p10), -1.0, %v829_v15 }
 0x159   : > { %v839_v18 = vmul.f32 %v831_v16, %v831_v16  ;;  %v594_v5 = vadd.f32 (!%p592_p10), -1.0, %v831_v16  ;;  %v415_v9 = vmul.f32 (!%p592_p10), %v593_v4, %v593_v4  ;;  %v431_v11 = vmul.f32 (!%p592_p10), 0.0051, %v835_v17 }
 0x15a   : > { %v433_v16 = vmul.f32 (!%p592_p10), 0.0051, %v843_v19  ;;  %v418_v15 = vmul.f32 (!%p592_p10), %v596_v8, %v596_v8 }
 0x15b   : > { %v331_v20 = vadd.f32 %v839_v18, %v835_v17  ;;  %v416_v10 = vmul.f32 (!%p592_p10), %v594_v5, %v594_v5  ;;  %v432_v12 = vmul.f32 (!%p592_p10), 0.0051, %v839_v18  ;;  %v367_v18 = vadd.s32 (!%p592_p10), 24, %v943_v6 }
 0x15d   : > { %v332_v22 = vadd.f32 %v331_v20, %v843_v19  ;;  %v852_v23 = vpop.f32.mrb[4].mxu0  ;;  %v365_v20 = vadd.s32 (!%p592_p10), 8, %v943_v6  ;;  %v448_v17 = vsub.f32 (!%p592_p10), %v416_v10, %v432_v12 }
 0x15e   : > { %v854_v24 = vpop.f32.mrb[5].mxu0  ;;  %v872_v31 = vmul.f32 %v852_v23, %v852_v23 }
 0x15f   : > { %v858_v25 = vmul.f32 %v854_v24, %v854_v24  ;;  %v333_v26 = vadd.f32 %v332_v22, %v849_v21  ;;  %v861_v27 = vpop.f32.mrb[6].mxu0  ;;  %v950_v22 = vand.u32 (!%p592_p10), 127, %v363_v3  ;;  %v597_v14 = vadd.f32 (!%p592_p10), -1.0, %v854_v24 }
 0x160   : > { %v863_v28 = vpop.f32.mrb[7].mxu0  ;;  %v877_v33 = vmul.f32 %v861_v27, %v861_v27  ;;  %v599_v24 = vadd.f32 (!%p592_p10), -1.0, %v852_v23  ;;  %v371_v3 = vadd.s32 (!%p592_p10), 56, %v943_v6 }
 0x161   : > { %v334_v29 = vadd.f32 %v333_v26, %v858_v25  ;;  %v868_v30 = vmul.f32 %v863_v28, %v863_v28  ;;  %v417_v26 = vmul.f32 (!%p592_p10), %v595_v7, %v595_v7  ;;  %v598_v13 = vadd.f32 (!%p592_p10), -1.0, %v863_v28 }
 0x162   : > { %vm382_vm2 = vcmp.eq.s32.totalorder (!%p592_p10), %v943_v6, %v950_v22  ;;  %vm383_vm3 = vcmp.eq.s32.totalorder (!%p592_p10), %v365_v20, %v950_v22  ;;  %v435_v19 = vmul.f32 (!%p592_p10), 0.0051, %v858_v25  ;;  %v368_v28 = vadd.s32 (!%p592_p10), 32, %v943_v6 }
 0x163   : > { %v335_v32 = vadd.f32 %v334_v29, %v868_v30  ;;  %v366_v29 = vadd.s32 (!%p592_p10), 16, %v943_v6  ;;  %vm385_vm5 = vcmp.eq.s32.totalorder (!%p592_p10), %v367_v18, %v950_v22  ;;  %v421_v25 = vmul.f32 (!%p592_p10), %v599_v24, %v599_v24 }
 0x164   : > { %vm386_vm6 = vcmp.eq.s32.totalorder (!%p592_p10), %v368_v28, %v950_v22  ;;  %vm389_vm9 = vcmp.eq.s32.totalorder (!%p592_p10), %v371_v3, %v950_v22 }
 0x165   : > { %v336_v34 = vadd.f32 %v335_v32, %v872_v31  ;;  %v880_v35 = vpop.f32.mrb[0].mxu1  ;;  %v434_v32 = vmul.f32 (!%p592_p10), 0.0051, %v849_v21  ;;  %vm384_vm4 = vcmp.eq.s32.totalorder (!%p592_p10), %v366_v29, %v950_v22  ;;  %v600_v21 = vadd.f32 (!%p592_p10), -1.0, %v861_v27 }
 0x166   : > { %v882_v36 = vpop.f32.mrb[1].mxu1  ;;  %v900_v43 = vmul.f32 %v880_v35, %v880_v35 }
 0x167   : > { %v886_v37 = vmul.f32 %v882_v36, %v882_v36  ;;  %v337_v38 = vadd.f32 %v336_v34, %v877_v33  ;;  %v889_v39 = vpop.f32.mrb[2].mxu1  ;;  %v447_v34 = vsub.f32 (!%p592_p10), %v415_v9, %v431_v11  ;;  %v601_v23 = vadd.f32 (!%p592_p10), -1.0, %v882_v36 }
 0x168   : > { %v891_v40 = vpop.f32.mrb[3].mxu1  ;;  %v905_v45 = vmul.f32 %v889_v39, %v889_v39 }
 0x169   : > { %v338_v41 = vadd.f32 %v337_v38, %v886_v37  ;;  %v896_v42 = vmul.f32 %v891_v40, %v891_v40  ;;  %v419_v38 = vmul.f32 (!%p592_p10), %v597_v14, %v597_v14  ;;  %v602_v27 = vadd.f32 (!%p592_p10), -1.0, %v891_v40 }
 0x16a   : > { %v423_v4 = vmul.f32 (!%p592_p10), %v601_v23, %v601_v23  ;;  %v439_v5 = vmul.f32 (!%p592_p10), 0.0051, %v886_v37  ;;  %v372_v40 = vadd.s32 (!%p592_p10), 64, %v943_v6 }
 0x16b   : > { %v339_v44 = vadd.f32 %v338_v41, %v896_v42  ;;  %v449_v41 = vsub.f32 (!%p592_p10), %v417_v26, %v433_v16  ;;  %v424_v10 = vmul.f32 (!%p592_p10), %v602_v27, %v602_v27  ;;  %v440_v11 = vmul.f32 (!%p592_p10), 0.0051, %v896_v42 }
 0x16c   : > { %v441_v16 = vmul.f32 (!%p592_p10), 0.0051, %v900_v43  ;;  %v455_v29 = vsub.f32 (!%p592_p10), %v423_v4, %v439_v5  ;;  %vm390_vm10 = vcmp.eq.s32.totalorder (!%p592_p10), %v372_v40, %v950_v22  ;;  %v379_v27 = vadd.s32 (!%p592_p10), 120, %v943_v6 }
 0x16d   : > { %v340_v46 = vadd.f32 %v339_v44, %v900_v43  ;;  %v908_v47 = vpop.f32.mrb[4].mxu1  ;;  %v420_v44 = vmul.f32 (!%p592_p10), %v598_v13, %v598_v13 }
 0x16e   : > { %v910_v48 = vpop.f32.mrb[5].mxu1  ;;  %v928_v55 = vmul.f32 %v908_v47, %v908_v47  ;;  %v607_v43 = vadd.f32 (!%p592_p10), -1.0, %v908_v47  ;;  %v471_v28 = vsel (!%p592_p10), %vm390_vm10, %v455_v29, 0.0  ;;  %v377_v47 = vadd.s32 (!%p592_p10), 104, %v943_v6 }
 0x16f   : > { %v914_v49 = vmul.f32 %v910_v48, %v910_v48  ;;  %v341_v50 = vadd.f32 %v340_v46, %v905_v45  ;;  %v917_v51 = vpop.f32.mrb[6].mxu1  ;;  %v436_v46 = vmul.f32 (!%p592_p10), 0.0051, %v868_v30  ;;  %v605_v37 = vadd.f32 (!%p592_p10), -1.0, %v910_v48 }
 0x170   : > { %v919_v52 = vpop.f32.mrb[7].mxu1  ;;  %v933_v57 = vmul.f32 %v917_v51, %v917_v51  ;;  %v375_v48 = vadd.s32 (!%p592_p10), 88, %v943_v6  ;;  %vm395_vm15 = vcmp.eq.s32.totalorder (!%p592_p10), %v377_v47, %v950_v22  ;;  %vm397_vm1 = vcmp.eq.s32.totalorder (!%p592_p10), %v379_v27, %v950_v22 }
 0x171   : > { %v342_v53 = vadd.f32 %v341_v50, %v914_v49  ;;  %v924_v54 = vmul.f32 %v919_v52, %v919_v52  ;;  %v450_v50 = vsub.f32 (!%p592_p10), %v418_v15, %v434_v32  ;;  %v606_v42 = vadd.f32 (!%p592_p10), -1.0, %v919_v52 }
 0x172   : > { %v376_v52 = vadd.s32 (!%p592_p10), 96, %v943_v6  ;;  %vm393_vm13 = vcmp.eq.s32.totalorder (!%p592_p10), %v375_v48, %v950_v22 }
 0x173   : > { %v343_v56 = vadd.f32 %v342_v53, %v924_v54  ;;  %v463_v53 = vsel (!%p592_p10), %vm382_vm2, %v447_v34, 0.0  ;;  %v442_v34 = vmul.f32 (!%p592_p10), 0.0051, %v905_v45  ;;  %v608_v45 = vadd.f32 (!%p592_p10), -1.0, %v917_v51 }
 0x174   : > { %vm394_vm14 = vcmp.eq.s32.totalorder (!%p592_p10), %v376_v52, %v950_v22 }
 0x175   : > { %v344_v58 = vadd.f32 %v343_v56, %v928_v55  ;;  %v464_v56 = vsel (!%p592_p10), %vm383_vm3, %v448_v17, 0.0  ;;  %v456_v17 = vsub.f32 (!%p592_p10), %v424_v10, %v440_v11 }
 0x176   : > { %v479_v30 = vadd.f32 (!%p592_p10), %v464_v56, %v463_v53 }
 0x177   : > { %v345_v59 = vadd.f32 %v344_v58, %v933_v57  ;;  %v369_v58 = vadd.s32 (!%p592_p10), 40, %v943_v6 }
 0x179   : > { %346 = vadd.xlane.f32.xlu0 %v345_v59  ;;  %v437_v59 = vmul.f32 (!%p592_p10), 0.0051, %v872_v31  ;;  %vm387_vm7 = vcmp.eq.s32.totalorder (!%p592_p10), %v369_v58, %v950_v22  ;;  %v603_v31 = vadd.f32 (!%p592_p10), -1.0, %v880_v35  ;;  %v373_v35 = vadd.s32 (!%p592_p10), 72, %v943_v6 }
 0x17a   : > { %v445_v58 = vmul.f32 (!%p592_p10), 0.0051, %v928_v55 }
 0x17b   : > { %v453_v7 = vsub.f32 (!%p592_p10), %v421_v25, %v437_v59  ;;  %v425_v26 = vmul.f32 (!%p592_p10), %v603_v31, %v603_v31  ;;  %vm391_vm11 = vcmp.eq.s32.totalorder (!%p592_p10), %v373_v35, %v950_v22  ;;  %v378_v59 = vadd.s32 (!%p592_p10), 112, %v943_v6 }
 0x17c   : > { %v472_v53 = vsel (!%p592_p10), %vm391_vm11, %v456_v17, 0.0 }
 0x17d   : > { %vm396_vm0 = vcmp.eq.s32.totalorder (!%p592_p10), %v378_v59, %v950_v22 }
 0x206   : > { %v347_v60 = vpop.xlane.xlu0 %346 }
 0x207   : > { %v348_v61 = vrot.slane %v347_v60, 4 }
 0x209   : > { %v349_v62 = vadd.f32 %v348_v61, %v347_v60  ;;  %v451_v60 = vsub.f32 (!%p592_p10), %v419_v38, %v435_v19  ;;  %v465_v61 = vsel (!%p592_p10), %vm384_vm4, %v449_v41, 0.0  ;;  %v427_v38 = vmul.f32 (!%p592_p10), %v605_v37, %v605_v37 }
 0x20a   : > { %v480_v36 = vadd.f32 (!%p592_p10), %v479_v30, %v465_v61  ;;  %v443_v19 = vmul.f32 (!%p592_p10), 0.0051, %v914_v49  ;;  %v457_v41 = vsub.f32 (!%p592_p10), %v425_v26, %v441_v16  ;;  %v429_v49 = vmul.f32 (!%p592_p10), %v607_v43, %v607_v43 }
 0x20b   : > { %v350_v63 = vrot.slane %v349_v62, 2  ;;  %v467_v8 = vsel (!%p592_p10), %vm386_vm6, %v451_v60, 0.0  ;;  %v430_v60 = vmul.f32 (!%p592_p10), %v608_v45, %v608_v45 }
 0x20c   : > { %v459_v23 = vsub.f32 (!%p592_p10), %v427_v38, %v443_v19 }
 0x20d   : > { %v351_v0 = vadd.f32 %v350_v63, %v349_v62  ;;  %v370_v62 = vadd.s32 (!%p592_p10), 48, %v943_v6  ;;  %v422_v63 = vmul.f32 (!%p592_p10), %v600_v21, %v600_v21 }
 0x20f   : > { %v352_v1 = vrot.slane %v351_v0, 1  ;;  %vm388_vm8 = vcmp.eq.s32.totalorder (!%p592_p10), %v370_v62, %v950_v22 }
 0x210   : > { %v469_v13 = vsel (!%p592_p10), %vm388_vm8, %v453_v7, 0.0 }
 0x211   : > { %v353_v2 = vadd.f32 %v352_v1, %v351_v0  ;;  %v438_v0 = vmul.f32 (!%p592_p10), 0.0051, %v877_v33  ;;  %v452_v1 = vsub.f32 (!%p592_p10), %v420_v44, %v436_v46  ;;  %v604_v33 = vadd.f32 (!%p592_p10), -1.0, %v889_v39 }
 0x212   : > { %v374_v39 = vadd.s32 (!%p592_p10), 80, %v943_v6  ;;  %v428_v44 = vmul.f32 (!%p592_p10), %v606_v42, %v606_v42  ;;  %v444_v46 = vmul.f32 (!%p592_p10), 0.0051, %v924_v54  ;;  %v446_v54 = vmul.f32 (!%p592_p10), 0.0051, %v933_v57 }
 0x213   : > { %644 = vpush %v353_v2  ;;  %v466_v2 = vsel (!%p592_p10), %vm385_vm5, %v450_v50, 0.0  ;;  %v454_v12 = vsub.f32 (!%p592_p10), %v422_v63, %v438_v0  ;;  %v468_v20 = vsel (!%p592_p10), %vm387_vm7, %v452_v1, 0.0  ;;  %v426_v32 = vmul.f32 (!%p592_p10), %v604_v33, %v604_v33 }
 0x214   : > { %v481_v9 = vadd.f32 (!%p592_p10), %v480_v36, %v466_v2  ;;  %vm392_vm12 = vcmp.eq.s32.totalorder (!%p592_p10), %v374_v39, %v950_v22  ;;  %v460_v61 = vsub.f32 (!%p592_p10), %v428_v44, %v444_v46  ;;  %v461_v63 = vsub.f32 (!%p592_p10), %v429_v49, %v445_v58 }
 0x215   : > { %v470_v18 = vsel (!%p592_p10), %vm389_vm9, %v454_v12, 0.0  ;;  %v458_v50 = vsub.f32 (!%p592_p10), %v426_v32, %v442_v34  ;;  %v473_v25 = vsel (!%p592_p10), %vm392_vm12, %v457_v41, 0.0  ;;  %v475_v0 = vsel (!%p592_p10), %vm394_vm14, %v459_v23, 0.0 }
 0x216   : > { %v482_v14 = vadd.f32 (!%p592_p10), %v481_v9, %v467_v8  ;;  %v462_v1 = vsub.f32 (!%p592_p10), %v430_v60, %v446_v54  ;;  %v476_v2 = vsel (!%p592_p10), %vm395_vm15, %v460_v61, 0.0  ;;  %v477_v31 = vsel (!%p592_p10), %vm396_vm0, %v461_v63, 0.0 }
 0x217   : > { %v474_v62 = vsel (!%p592_p10), %vm393_vm13, %v458_v50, 0.0 }
 0x218   : > { %v483_v15 = vadd.f32 (!%p592_p10), %v482_v14, %v468_v20  ;;  %v478_v57 = vsel (!%p592_p10), %vm397_vm1, %v462_v1, 0.0 }
 0x21a   : > { %v484_v24 = vadd.f32 (!%p592_p10), %v483_v15, %v469_v13 }
 0x21c   : > { %v485_v21 = vadd.f32 (!%p592_p10), %v484_v24, %v470_v18 }
 0x21e   : > { %v486_v56 = vadd.f32 (!%p592_p10), %v485_v21, %v471_v28 }
 0x220   : > { %v487_v51 = vadd.f32 (!%p592_p10), %v486_v56, %v472_v53 }
 0x222   : > { %v488_v30 = vadd.f32 (!%p592_p10), %v487_v51, %v473_v25 }
 0x224   : > { %v489_v55 = vadd.f32 (!%p592_p10), %v488_v30, %v474_v62 }
 0x226   : > { %v490_v3 = vadd.f32 (!%p592_p10), %v489_v55, %v475_v0 }
 0x228   : > { %v491_v36 = vadd.f32 (!%p592_p10), %v490_v3, %v476_v2 }
 0x22a   : > { %v492_v4 = vadd.f32 (!%p592_p10), %v491_v36, %v477_v31 }
 0x22c   : > { %v493_v5 = vadd.f32 (!%p592_p10), %v492_v4, %v478_v57 }
 0x22e   : > { %494 = vadd.xlane.f32.xlu0 (!%p592_p10), %v493_v5 }
 0x243   : > { %362 = sbr.rel (%p592_p10) target bundleno = 765 (0x2fd), region = 36 }
 0x244   : > { %s645_s29 = spop %644 }
 0x245   : > { %s355_s30 = smul.f32 0.0051, %s645_s29 }
 0x247   : > { %s356_s3 = sadd.f32 %s355_s30, %s314_s28 }
 0x249   : > { %358 = sst [smem:[#allocation2]] %s356_s3 }
 0x24a   : > { %s398_s4 = sld [smem:[#allocation2]] }
 0x2bb   : > { %v495_v6 = vpop.xlane.xlu0 %494 }
 0x2bc   : > { %v496_v7 = vrot.slane %v495_v6, 4 }
 0x2be   : > { %v497_v8 = vadd.f32 %v496_v7, %v495_v6 }
 0x2c0   : > { %v498_v40 = vrot.slane %v497_v8, 2 }
 0x2c2   : > { %v499_v33 = vadd.f32 %v498_v40, %v497_v8 }
 0x2c4   : > { %v500_v9 = vrot.slane %v499_v33, 1 }
 0x2c6   : > { %v501_v10 = vadd.f32 %v500_v9, %v499_v33 }
 0x2c8   : > { %646 = vpush %v501_v10 }
 0x2f9   : > { %s647_s5 = spop %646 }
 0x2fa   : > { %s503_s6 = sadd.f32 %s647_s5, %s398_s4 }
 0x2fc   : > { %504 = sst [smem:[#allocation2]] %s503_s6 }
 0x2fd PF: > { %p654_p11 = scmp.eq.s32.totalorder %s577_s14, 3  ;;  %s699_s9 = scalar_lea.hbm %s1040_s2, 16 }
 0x2fe   : > { %p700_p12 = scmp.ne.s32.totalorder %s1040_s2, %s699_s9  ;;  %p705_p1 = scmp.lt.u32.totalorder %s699_s9, %s1040_s2 }
 0x300   : > { %p701_p13 = pnand %p700_p12, %p654_p11 }
 0x302   : > { %p702_p0 = pneg %p701_p13 }
 0x304   : > { %p707_p2 = pnand %p705_p1, %p702_p0 }
 0x306   : > { %710 = shalt.err (!%p707_p2)
}
 0x307   : > { %s756_s20 = smov [#allocation2]  }
 0x308   : > { %651 = dma.smem_to_hbm (%p654_p11), %s756_s20, 16, %s1040_s2, [#allocation3]  }
 0x309   : > { %732 = dma.done.wait (%p654_p11), [#allocation3], 16  }
 0x30a   : > { %734 = vsyncadd (%p654_p11), [#allocation3], 4294967280 }
 0x30b   : > { %518 = sfence }
 0x30c PF: > { %s13_s13 = sadd.s32 1, %s753_s13   ;;  %s1041_s9 = smov %s745_s11 }
 0x30d   : > { %p10_p3 = scmp.ge.s32.totalorder %s13_s13, 6   ;;  %s1042_s10 = smov %s749_s12 }
 0x30e   : > { %s1043_s11 = smov %s1046_s15  ;;  %s1044_s12 = smov %s1050_s16 }
 0x30f   :  { %12 = sbr.rel (!%p10_p3) target bundleno = 3 (0x3), region = 68 }
 0x316   :  { %524 = vsyncpa [#allocation3], 1 }
 0x317   :  { %526 = vsyncpa [#allocation3 + $0x1], 1 }

</bundles_post_ra>
